<compile_context>
chip_gen: v7x
topology: tpu7x:2x2x1
jax: 0.10.0
libtpu: 0.0.40
codegen_flags: <defaults>
</compile_context>

<pallas_src>
import math
from functools import partial

import jax
import jax.numpy as jnp
from jax import lax
from jax.experimental import pallas as pl
from jax.experimental.pallas import tpu as pltpu

EPS = 1e-5  # LayerNorm eps from the module


def _gelu_tanh(x):
    # tanh-based GELU (EUP-backed tanh); accuracy well within test tolerance.
    c = math.sqrt(2.0 / math.pi)
    return 0.5 * x * (1.0 + jnp.tanh(c * (x + 0.044715 * x * x * x)))


def _layernorm(x, gamma, beta):
    # Matches the custom LayerNorm: biased variance, eps inside the sqrt.
    mean = jnp.mean(x, axis=-1, keepdims=True)
    var = jnp.mean((x - mean) ** 2, axis=-1, keepdims=True)
    return (x - mean) * lax.rsqrt(var + EPS) * gamma + beta


def transformer_block_kernel(BB, T, num_heads, head_size,
                             x_ref, mask_ref, g1_ref, be1_ref,
                             wq_ref, wk_ref, wv_ref, wo_ref, bo_ref,
                             g2_ref, be2_ref,
                             wf1_ref, bf1_ref, wf2_ref, bf2_ref,
                             o_ref, attn_scr):
    f32 = jnp.float32
    bf16 = jnp.bfloat16

    x = x_ref[...]                        # (R, E) f32, R = BB*T flattened rows
    mask = mask_ref[...]                  # (T, T) additive causal mask (0 / -1e30)
    scale = 1.0 / math.sqrt(head_size)

    # --- LayerNorm pre-heads ---
    xn = _layernorm(x, g1_ref[...], be1_ref[...])
    xnb = xn.astype(bf16)

    # --- fused Q/K/V projections: full-E contraction, bf16 operands, f32 acc ---
    q = jnp.dot(xnb, wq_ref[...], preferred_element_type=f32)   # (R, HD)
    k = jnp.dot(xnb, wk_ref[...], preferred_element_type=f32)
    v = jnp.dot(xnb, wv_ref[...], preferred_element_type=f32)

    # --- per (batch-in-block, head) causal softmax(QK^T)V ---
    # results land in a VMEM scratch ref so live ranges stay bounded.
    for b in range(BB):                           # static, small unroll
        r0, r1 = b * T, (b + 1) * T
        for h in range(num_heads):
            c0, c1 = h * head_size, (h + 1) * head_size
            qh = q[r0:r1, c0:c1]
            kh = k[r0:r1, c0:c1]
            vh = v[r0:r1, c0:c1]
            s = jnp.dot(qh, kh.T, preferred_element_type=f32) * scale + mask
            m = jnp.max(s, axis=-1, keepdims=True)
            e = jnp.exp(s - m)
            p = e * pl.reciprocal(jnp.sum(e, axis=-1, keepdims=True), approx=True)
            attn_scr[r0:r1, c0:c1] = jnp.dot(p, vh, preferred_element_type=f32)

    # --- fused output projection: single (R,HD)@(HD,E) matmul ---
    attn = jnp.dot(attn_scr[...].astype(bf16), wo_ref[...],
                   preferred_element_type=f32) + bo_ref[...]

    # residual #1 (dropout_postheads = identity in eval)
    x2 = x + attn

    # --- LayerNorm pre-ffwd ---
    x3 = _layernorm(x2, g2_ref[...], be2_ref[...])

    # --- FeedForward (linear -> GELU -> linear), bf16 matmuls / f32 acc ---
    h1 = jnp.dot(x3.astype(bf16), wf1_ref[...], preferred_element_type=f32) + bf1_ref[...]
    h1 = _gelu_tanh(h1)
    ff = jnp.dot(h1.astype(bf16), wf2_ref[...], preferred_element_type=f32) + bf2_ref[...]

    # residual #2: the PyTorch module adds the *normalized* x3, not x2.
    o_ref[...] = x3 + ff


def transformer_block(toks, params, *, num_heads, head_size, max_rows_per_step=128):
    B, T, E = toks.shape
    HD = num_heads * head_size
    (g1, be1, wq, wk, wv, wo, bo, g2, be2, wf1, bf1, wf2, bf2) = params
    G = wf1.shape[-1]

    # Batch elements per grid step (widen the slab, keep unroll bounded).
    BB = 1
    for cand in range(1, B + 1):
        if B % cand == 0 and cand * T <= max_rows_per_step and cand <= 8:
            BB = cand
    R = BB * T

    # Flatten (B, T) -> rows so the per-step tile is row-dense.
    x2d = toks.reshape(B * T, E).astype(jnp.float32)

    # Causal additive mask, precomputed once (finite -1e30, not -inf).
    mask = jnp.where(jnp.arange(T)[None, :] <= jnp.arange(T)[:, None],
                     0.0, -1e30).astype(jnp.float32)

    # Cast matmul weights to bf16 at the boundary; keep biases / LN params f32.
    bf = jnp.bfloat16
    wq_b, wk_b, wv_b, wo_b = wq.astype(bf), wk.astype(bf), wv.astype(bf), wo.astype(bf)
    wf1_b, wf2_b = wf1.astype(bf), wf2.astype(bf)

    kernel = partial(transformer_block_kernel, BB, T, num_heads, head_size)
    const = lambda i: (0, 0)

    grid_spec = pltpu.PrefetchScalarGridSpec(
        num_scalar_prefetch=0,
        grid=(B // BB,),
        in_specs=[
            pl.BlockSpec((R, E), lambda i: (i, 0)),   # toks (flattened rows)
            pl.BlockSpec((T, T), const),              # causal mask
            pl.BlockSpec((1, E), const),              # ln1 gamma
            pl.BlockSpec((1, E), const),              # ln1 beta
            pl.BlockSpec((E, HD), const),             # Wq (all heads, bf16)
            pl.BlockSpec((E, HD), const),             # Wk
            pl.BlockSpec((E, HD), const),             # Wv
            pl.BlockSpec((HD, E), const),             # Wo
            pl.BlockSpec((1, E), const),              # bo
            pl.BlockSpec((1, E), const),              # ln2 gamma
            pl.BlockSpec((1, E), const),              # ln2 beta
            pl.BlockSpec((E, G), const),              # W1 (ffwd pre, bf16)
            pl.BlockSpec((1, G), const),              # b1
            pl.BlockSpec((G, E), const),              # W2 (ffwd post, bf16)
            pl.BlockSpec((1, E), const),              # b2
        ],
        out_specs=pl.BlockSpec((R, E), lambda i: (i, 0)),
        scratch_shapes=[pltpu.VMEM((R, HD), jnp.float32)],   # per-head attn out
    )

    out2d = pl.pallas_call(
        kernel,
        out_shape=jax.ShapeDtypeStruct((B * T, E), jnp.float32),
        grid_spec=grid_spec,
        compiler_params=pltpu.CompilerParams(dimension_semantics=("parallel",)),
    )(x2d, mask, g1, be1, wq_b, wk_b, wv_b, wo_b, bo, g2, be2,
      wf1_b, bf1, wf2_b, bf2)
    return out2d.reshape(B, T, E)


def reference_block(toks, params, *, num_heads, head_size):
    """Pure-JAX f32 reference (exact erf GELU) for validation."""
    (g1, be1, wq, wk, wv, wo, bo, g2, be2, wf1, bf1, wf2, bf2) = params
    from jax.scipy.special import erf as erf_true

    def ln(x, g, b):
        mean = jnp.mean(x, -1, keepdims=True)
        var = jnp.mean((x - mean) ** 2, -1, keepdims=True)
        return (x - mean) / jnp.sqrt(var + EPS) * g + b

    def one(x):                                  # x: (T, E)
        T, E = x.shape
        xn = ln(x, g1, be1)
        q = xn @ wq
        k = xn @ wk
        v = xn @ wv
        causal = jnp.arange(T)[None, :] <= jnp.arange(T)[:, None]
        outs = []
        for h in range(num_heads):
            sl = slice(h * head_size, (h + 1) * head_size)
            s = (q[:, sl] @ k[:, sl].T) / math.sqrt(head_size)
            s = jnp.where(causal, s, -jnp.inf)
            p = jax.nn.softmax(s, axis=-1)
            outs.append(p @ v[:, sl])
        attn = jnp.concatenate(outs, axis=-1) @ wo + bo
        x2 = x + attn
        x3 = ln(x2, g2, be2)
        h1 = x3 @ wf1 + bf1
        h1 = 0.5 * h1 * (1.0 + erf_true(h1 / math.sqrt(2.0)))
        ff = h1 @ wf2 + bf2
        return x3 + ff

    return jax.vmap(one)(toks)


if __name__ == "__main__":
    # Small GPT-1-style config.
    B, T = 2, 8                  # batch, sequence (= block_size)
    E = 32                       # embed_size
    num_heads, head_size = 4, 8  # num_heads * head_size == embed_size
    G = 4 * E                    # gelu_size
    HD = num_heads * head_size

    key = jax.random.PRNGKey(0)
    keys = jax.random.split(key, 10)
    scale = 0.1

    toks = jax.random.normal(keys[0], (B, T, E), jnp.float32)

    params = (
        jnp.ones((1, E), jnp.float32),                              # ln1 gamma
        jnp.zeros((1, E), jnp.float32),                             # ln1 beta
        scale * jax.random.normal(keys[1], (E, HD), jnp.float32),   # Wq
        scale * jax.random.normal(keys[2], (E, HD), jnp.float32),   # Wk
        scale * jax.random.normal(keys[3], (E, HD), jnp.float32),   # Wv
        scale * jax.random.normal(keys[4], (HD, E), jnp.float32),   # Wo
        scale * jax.random.normal(keys[5], (1, E), jnp.float32),    # bo
        jnp.ones((1, E), jnp.float32),                              # ln2 gamma
        jnp.zeros((1, E), jnp.float32),                             # ln2 beta
        scale * jax.random.normal(keys[6], (E, G), jnp.float32),    # W1
        scale * jax.random.normal(keys[7], (1, G), jnp.float32),    # b1
        scale * jax.random.normal(keys[8], (G, E), jnp.float32),    # W2
        scale * jax.random.normal(keys[9], (1, E), jnp.float32),    # b2
    )

    out = transformer_block(toks, params, num_heads=num_heads, head_size=head_size)
    out = jax.block_until_ready(out)

    ref = reference_block(toks, params, num_heads=num_heads, head_size=head_size)
    ref = jax.block_until_ready(ref)

    assert out.shape == (B, T, E) and out.dtype == jnp.float32
    assert jnp.allclose(out, ref, atol=2e-2, rtol=2e-2), \
        f"mismatch: max abs diff {jnp.max(jnp.abs(out - ref))}"

    print("KERNEL_OK")
</pallas_src>

<mosaic_0001>
module attributes {stable_mosaic.version = 11 : i64} {
  func.func @transformer_block_kernel(%arg0: i32, %arg1: memref<16x32xf32, #tpu.memory_space<vmem>>, %arg2: memref<8x8xf32, #tpu.memory_space<vmem>>, %arg3: memref<1x32xf32, #tpu.memory_space<vmem>>, %arg4: memref<1x32xf32, #tpu.memory_space<vmem>>, %arg5: memref<32x32xbf16, #tpu.memory_space<vmem>>, %arg6: memref<32x32xbf16, #tpu.memory_space<vmem>>, %arg7: memref<32x32xbf16, #tpu.memory_space<vmem>>, %arg8: memref<32x32xbf16, #tpu.memory_space<vmem>>, %arg9: memref<1x32xf32, #tpu.memory_space<vmem>>, %arg10: memref<1x32xf32, #tpu.memory_space<vmem>>, %arg11: memref<1x32xf32, #tpu.memory_space<vmem>>, %arg12: memref<32x128xbf16, #tpu.memory_space<vmem>>, %arg13: memref<1x128xf32, #tpu.memory_space<vmem>>, %arg14: memref<128x32xbf16, #tpu.memory_space<vmem>>, %arg15: memref<1x32xf32, #tpu.memory_space<vmem>>, %arg16: memref<16x32xf32, #tpu.memory_space<vmem>>, %arg17: memref<16x32xf32, #tpu.memory_space<vmem>>) attributes {dimension_semantics = [#tpu.dimension_semantics<parallel>], iteration_bounds = array<i64: 1>, scalar_prefetch = 0 : i64, scratch_operands = 1 : i64, tpu.core_type = #tpu.core_type<tc>, window_params = [{transform_indices = @transform_0, window_bounds = array<i64: 16, 32>}, {pipeline_mode = #tpu.pipeline_mode<synchronous>, transform_indices = @transform_1, window_bounds = array<i64: 8, 8>}, {pipeline_mode = #tpu.pipeline_mode<synchronous>, transform_indices = @transform_2, window_bounds = array<i64: 1, 32>}, {pipeline_mode = #tpu.pipeline_mode<synchronous>, transform_indices = @transform_3, window_bounds = array<i64: 1, 32>}, {pipeline_mode = #tpu.pipeline_mode<synchronous>, transform_indices = @transform_4, window_bounds = array<i64: 32, 32>}, {pipeline_mode = #tpu.pipeline_mode<synchronous>, transform_indices = @transform_5, window_bounds = array<i64: 32, 32>}, {pipeline_mode = #tpu.pipeline_mode<synchronous>, transform_indices = @transform_6, window_bounds = array<i64: 32, 32>}, {pipeline_mode = #tpu.pipeline_mode<synchronous>, transform_indices = @transform_7, window_bounds = array<i64: 32, 32>}, {pipeline_mode = #tpu.pipeline_mode<synchronous>, transform_indices = @transform_8, window_bounds = array<i64: 1, 32>}, {pipeline_mode = #tpu.pipeline_mode<synchronous>, transform_indices = @transform_9, window_bounds = array<i64: 1, 32>}, {pipeline_mode = #tpu.pipeline_mode<synchronous>, transform_indices = @transform_10, window_bounds = array<i64: 1, 32>}, {pipeline_mode = #tpu.pipeline_mode<synchronous>, transform_indices = @transform_11, window_bounds = array<i64: 32, 128>}, {pipeline_mode = #tpu.pipeline_mode<synchronous>, transform_indices = @transform_12, window_bounds = array<i64: 1, 128>}, {pipeline_mode = #tpu.pipeline_mode<synchronous>, transform_indices = @transform_13, window_bounds = array<i64: 128, 32>}, {pipeline_mode = #tpu.pipeline_mode<synchronous>, transform_indices = @transform_14, window_bounds = array<i64: 1, 32>}, {transform_indices = @transform_15, window_bounds = array<i64: 16, 32>}]} {
    %c0 = arith.constant 0 : index
    %c0_0 = arith.constant 0 : index
    %0 = vector.load %arg1[%c0, %c0_0] : memref<16x32xf32, #tpu.memory_space<vmem>>, vector<16x32xf32>
    %c0_1 = arith.constant 0 : index
    %c0_2 = arith.constant 0 : index
    %1 = vector.load %arg2[%c0_1, %c0_2] : memref<8x8xf32, #tpu.memory_space<vmem>>, vector<8x8xf32>
    %c0_3 = arith.constant 0 : index
    %c0_4 = arith.constant 0 : index
    %2 = vector.load %arg3[%c0_3, %c0_4] : memref<1x32xf32, #tpu.memory_space<vmem>>, vector<1x32xf32>
    %c0_5 = arith.constant 0 : index
    %c0_6 = arith.constant 0 : index
    %3 = vector.load %arg4[%c0_5, %c0_6] : memref<1x32xf32, #tpu.memory_space<vmem>>, vector<1x32xf32>
    %cst = arith.constant dense<0.000000e+00> : vector<16xf32>
    %4 = vector.multi_reduction <add>, %0, %cst [1] : vector<16x32xf32> to vector<16xf32>
    %5 = vector.shape_cast %4 : vector<16xf32> to vector<16x1xf32>
    %cst_7 = arith.constant 3.200000e+01 : f32
    %6 = vector.broadcast %cst_7 : f32 to vector<16x1xf32>
    %7 = arith.divf %5, %6 : vector<16x1xf32>
    %8 = vector.broadcast %7 : vector<16x1xf32> to vector<16x32xf32>
    %9 = arith.subf %0, %8 : vector<16x32xf32>
    %10 = arith.mulf %9, %9 : vector<16x32xf32>
    %cst_8 = arith.constant dense<0.000000e+00> : vector<16xf32>
    %11 = vector.multi_reduction <add>, %10, %cst_8 [1] : vector<16x32xf32> to vector<16xf32>
    %12 = vector.shape_cast %11 : vector<16xf32> to vector<16x1xf32>
    %cst_9 = arith.constant 3.200000e+01 : f32
    %13 = vector.broadcast %cst_9 : f32 to vector<16x1xf32>
    %14 = arith.divf %12, %13 : vector<16x1xf32>
    %15 = vector.broadcast %7 : vector<16x1xf32> to vector<16x32xf32>
    %16 = arith.subf %0, %15 : vector<16x32xf32>
    %cst_10 = arith.constant 9.99999974E-6 : f32
    %17 = vector.broadcast %cst_10 : f32 to vector<16x1xf32>
    %18 = arith.addf %14, %17 : vector<16x1xf32>
    %19 = math.rsqrt %18 : vector<16x1xf32>
    %20 = vector.broadcast %19 : vector<16x1xf32> to vector<16x32xf32>
    %21 = arith.mulf %16, %20 : vector<16x32xf32>
    %22 = vector.broadcast %2 : vector<1x32xf32> to vector<16x32xf32>
    %23 = arith.mulf %21, %22 : vector<16x32xf32>
    %24 = vector.broadcast %3 : vector<1x32xf32> to vector<16x32xf32>
    %25 = arith.addf %23, %24 : vector<16x32xf32>
    %26 = arith.truncf %25 : vector<16x32xf32> to vector<16x32xbf16>
    %c0_11 = arith.constant 0 : index
    %c0_12 = arith.constant 0 : index
    %27 = vector.load %arg5[%c0_11, %c0_12] : memref<32x32xbf16, #tpu.memory_space<vmem>>, vector<32x32xbf16>
    %cst_13 = arith.constant dense<0.000000e+00> : vector<16x32xf32>
    %28 = tpu.matmul %26, %27, %cst_13 {dimension_numbers = #tpu.dot_dimension_numbers<[1], [0], [0], [1], [0, 0, 1, 1], [], []>} : vector<16x32xbf16>, vector<32x32xbf16>, vector<16x32xf32> -> vector<16x32xf32>
    %c0_14 = arith.constant 0 : index
    %c0_15 = arith.constant 0 : index
    %29 = vector.load %arg6[%c0_14, %c0_15] : memref<32x32xbf16, #tpu.memory_space<vmem>>, vector<32x32xbf16>
    %cst_16 = arith.constant dense<0.000000e+00> : vector<16x32xf32>
    %30 = tpu.matmul %26, %29, %cst_16 {dimension_numbers = #tpu.dot_dimension_numbers<[1], [0], [0], [1], [0, 0, 1, 1], [], []>} : vector<16x32xbf16>, vector<32x32xbf16>, vector<16x32xf32> -> vector<16x32xf32>
    %c0_17 = arith.constant 0 : index
    %c0_18 = arith.constant 0 : index
    %31 = vector.load %arg7[%c0_17, %c0_18] : memref<32x32xbf16, #tpu.memory_space<vmem>>, vector<32x32xbf16>
    %cst_19 = arith.constant dense<0.000000e+00> : vector<16x32xf32>
    %32 = tpu.matmul %26, %31, %cst_19 {dimension_numbers = #tpu.dot_dimension_numbers<[1], [0], [0], [1], [0, 0, 1, 1], [], []>} : vector<16x32xbf16>, vector<32x32xbf16>, vector<16x32xf32> -> vector<16x32xf32>
    %33 = vector.extract_strided_slice %28 {offsets = [0, 0], sizes = [8, 8], strides = [1, 1]} : vector<16x32xf32> to vector<8x8xf32>
    %34 = vector.extract_strided_slice %30 {offsets = [0, 0], sizes = [8, 8], strides = [1, 1]} : vector<16x32xf32> to vector<8x8xf32>
    %35 = vector.extract_strided_slice %32 {offsets = [0, 0], sizes = [8, 8], strides = [1, 1]} : vector<16x32xf32> to vector<8x8xf32>
    %36 = tpu.transpose %34, [1, 0] : vector<8x8xf32> -> vector<8x8xf32>
    %cst_20 = arith.constant dense<0.000000e+00> : vector<8x8xf32>
    %37 = tpu.matmul %33, %36, %cst_20 {dimension_numbers = #tpu.dot_dimension_numbers<[1], [0], [0], [1], [0, 0, 1, 1], [], []>} : vector<8x8xf32>, vector<8x8xf32>, vector<8x8xf32> -> vector<8x8xf32>
    %cst_21 = arith.constant 0.353553385 : f32
    %38 = vector.broadcast %cst_21 : f32 to vector<8x8xf32>
    %39 = arith.mulf %37, %38 : vector<8x8xf32>
    %40 = arith.addf %39, %1 : vector<8x8xf32>
    %cst_22 = arith.constant dense<0xFF800000> : vector<8xf32>
    %41 = vector.multi_reduction <maximumf>, %40, %cst_22 [1] : vector<8x8xf32> to vector<8xf32>
    %42 = vector.shape_cast %41 : vector<8xf32> to vector<8x1xf32>
    %43 = vector.broadcast %42 : vector<8x1xf32> to vector<8x8xf32>
    %44 = arith.subf %40, %43 : vector<8x8xf32>
    %45 = math.exp %44 : vector<8x8xf32>
    %cst_23 = arith.constant dense<0.000000e+00> : vector<8xf32>
    %46 = vector.multi_reduction <add>, %45, %cst_23 [1] : vector<8x8xf32> to vector<8xf32>
    %47 = vector.shape_cast %46 : vector<8xf32> to vector<8x1xf32>
    %48 = tpu.reciprocal %47 {approx = true} : vector<8x1xf32> -> vector<8x1xf32>
    %49 = vector.broadcast %48 : vector<8x1xf32> to vector<8x8xf32>
    %50 = arith.mulf %45, %49 : vector<8x8xf32>
    %cst_24 = arith.constant dense<0.000000e+00> : vector<8x8xf32>
    %51 = tpu.matmul %50, %35, %cst_24 {dimension_numbers = #tpu.dot_dimension_numbers<[1], [0], [0], [1], [0, 0, 1, 1], [], []>} : vector<8x8xf32>, vector<8x8xf32>, vector<8x8xf32> -> vector<8x8xf32>
    %c0_25 = arith.constant 0 : index
    %c0_26 = arith.constant 0 : index
    %52 = vector.load %arg17[%c0_25, %c0_26] : memref<16x32xf32, #tpu.memory_space<vmem>>, vector<8x8xf32>
    tpu.vector_store %arg17[%c0_25, %c0_26], %51 {strides = array<i32>} : memref<16x32xf32, #tpu.memory_space<vmem>>, vector<8x8xf32>,
    %53 = vector.extract_strided_slice %28 {offsets = [0, 8], sizes = [8, 8], strides = [1, 1]} : vector<16x32xf32> to vector<8x8xf32>
    %54 = vector.extract_strided_slice %30 {offsets = [0, 8], sizes = [8, 8], strides = [1, 1]} : vector<16x32xf32> to vector<8x8xf32>
    %55 = vector.extract_strided_slice %32 {offsets = [0, 8], sizes = [8, 8], strides = [1, 1]} : vector<16x32xf32> to vector<8x8xf32>
    %56 = tpu.transpose %54, [1, 0] : vector<8x8xf32> -> vector<8x8xf32>
    %cst_27 = arith.constant dense<0.000000e+00> : vector<8x8xf32>
    %57 = tpu.matmul %53, %56, %cst_27 {dimension_numbers = #tpu.dot_dimension_numbers<[1], [0], [0], [1], [0, 0, 1, 1], [], []>} : vector<8x8xf32>, vector<8x8xf32>, vector<8x8xf32> -> vector<8x8xf32>
    %cst_28 = arith.constant 0.353553385 : f32
    %58 = vector.broadcast %cst_28 : f32 to vector<8x8xf32>
    %59 = arith.mulf %57, %58 : vector<8x8xf32>
    %60 = arith.addf %59, %1 : vector<8x8xf32>
    %cst_29 = arith.constant dense<0xFF800000> : vector<8xf32>
    %61 = vector.multi_reduction <maximumf>, %60, %cst_29 [1] : vector<8x8xf32> to vector<8xf32>
    %62 = vector.shape_cast %61 : vector<8xf32> to vector<8x1xf32>
    %63 = vector.broadcast %62 : vector<8x1xf32> to vector<8x8xf32>
    %64 = arith.subf %60, %63 : vector<8x8xf32>
    %65 = math.exp %64 : vector<8x8xf32>
    %cst_30 = arith.constant dense<0.000000e+00> : vector<8xf32>
    %66 = vector.multi_reduction <add>, %65, %cst_30 [1] : vector<8x8xf32> to vector<8xf32>
    %67 = vector.shape_cast %66 : vector<8xf32> to vector<8x1xf32>
    %68 = tpu.reciprocal %67 {approx = true} : vector<8x1xf32> -> vector<8x1xf32>
    %69 = vector.broadcast %68 : vector<8x1xf32> to vector<8x8xf32>
    %70 = arith.mulf %65, %69 : vector<8x8xf32>
    %cst_31 = arith.constant dense<0.000000e+00> : vector<8x8xf32>
    %71 = tpu.matmul %70, %55, %cst_31 {dimension_numbers = #tpu.dot_dimension_numbers<[1], [0], [0], [1], [0, 0, 1, 1], [], []>} : vector<8x8xf32>, vector<8x8xf32>, vector<8x8xf32> -> vector<8x8xf32>
    %c0_32 = arith.constant 0 : index
    %c8 = arith.constant 8 : index
    %72 = vector.load %arg17[%c0_32, %c8] : memref<16x32xf32, #tpu.memory_space<vmem>>, vector<8x8xf32>
    tpu.vector_store %arg17[%c0_32, %c8], %71 {strides = array<i32>} : memref<16x32xf32, #tpu.memory_space<vmem>>, vector<8x8xf32>,
    %73 = vector.extract_strided_slice %28 {offsets = [0, 16], sizes = [8, 8], strides = [1, 1]} : vector<16x32xf32> to vector<8x8xf32>
    %74 = vector.extract_strided_slice %30 {offsets = [0, 16], sizes = [8, 8], strides = [1, 1]} : vector<16x32xf32> to vector<8x8xf32>
    %75 = vector.extract_strided_slice %32 {offsets = [0, 16], sizes = [8, 8], strides = [1, 1]} : vector<16x32xf32> to vector<8x8xf32>
    %76 = tpu.transpose %74, [1, 0] : vector<8x8xf32> -> vector<8x8xf32>
    %cst_33 = arith.constant dense<0.000000e+00> : vector<8x8xf32>
    %77 = tpu.matmul %73, %76, %cst_33 {dimension_numbers = #tpu.dot_dimension_numbers<[1], [0], [0], [1], [0, 0, 1, 1], [], []>} : vector<8x8xf32>, vector<8x8xf32>, vector<8x8xf32> -> vector<8x8xf32>
    %cst_34 = arith.constant 0.353553385 : f32
    %78 = vector.broadcast %cst_34 : f32 to vector<8x8xf32>
    %79 = arith.mulf %77, %78 : vector<8x8xf32>
    %80 = arith.addf %79, %1 : vector<8x8xf32>
    %cst_35 = arith.constant dense<0xFF800000> : vector<8xf32>
    %81 = vector.multi_reduction <maximumf>, %80, %cst_35 [1] : vector<8x8xf32> to vector<8xf32>
    %82 = vector.shape_cast %81 : vector<8xf32> to vector<8x1xf32>
    %83 = vector.broadcast %82 : vector<8x1xf32> to vector<8x8xf32>
    %84 = arith.subf %80, %83 : vector<8x8xf32>
    %85 = math.exp %84 : vector<8x8xf32>
    %cst_36 = arith.constant dense<0.000000e+00> : vector<8xf32>
    %86 = vector.multi_reduction <add>, %85, %cst_36 [1] : vector<8x8xf32> to vector<8xf32>
    %87 = vector.shape_cast %86 : vector<8xf32> to vector<8x1xf32>
    %88 = tpu.reciprocal %87 {approx = true} : vector<8x1xf32> -> vector<8x1xf32>
    %89 = vector.broadcast %88 : vector<8x1xf32> to vector<8x8xf32>
    %90 = arith.mulf %85, %89 : vector<8x8xf32>
    %cst_37 = arith.constant dense<0.000000e+00> : vector<8x8xf32>
    %91 = tpu.matmul %90, %75, %cst_37 {dimension_numbers = #tpu.dot_dimension_numbers<[1], [0], [0], [1], [0, 0, 1, 1], [], []>} : vector<8x8xf32>, vector<8x8xf32>, vector<8x8xf32> -> vector<8x8xf32>
    %c0_38 = arith.constant 0 : index
    %c16 = arith.constant 16 : index
    %92 = vector.load %arg17[%c0_38, %c16] : memref<16x32xf32, #tpu.memory_space<vmem>>, vector<8x8xf32>
    tpu.vector_store %arg17[%c0_38, %c16], %91 {strides = array<i32>} : memref<16x32xf32, #tpu.memory_space<vmem>>, vector<8x8xf32>,
    %93 = vector.extract_strided_slice %28 {offsets = [0, 24], sizes = [8, 8], strides = [1, 1]} : vector<16x32xf32> to vector<8x8xf32>
    %94 = vector.extract_strided_slice %30 {offsets = [0, 24], sizes = [8, 8], strides = [1, 1]} : vector<16x32xf32> to vector<8x8xf32>
    %95 = vector.extract_strided_slice %32 {offsets = [0, 24], sizes = [8, 8], strides = [1, 1]} : vector<16x32xf32> to vector<8x8xf32>
    %96 = tpu.transpose %94, [1, 0] : vector<8x8xf32> -> vector<8x8xf32>
    %cst_39 = arith.constant dense<0.000000e+00> : vector<8x8xf32>
    %97 = tpu.matmul %93, %96, %cst_39 {dimension_numbers = #tpu.dot_dimension_numbers<[1], [0], [0], [1], [0, 0, 1, 1], [], []>} : vector<8x8xf32>, vector<8x8xf32>, vector<8x8xf32> -> vector<8x8xf32>
    %cst_40 = arith.constant 0.353553385 : f32
    %98 = vector.broadcast %cst_40 : f32 to vector<8x8xf32>
    %99 = arith.mulf %97, %98 : vector<8x8xf32>
    %100 = arith.addf %99, %1 : vector<8x8xf32>
    %cst_41 = arith.constant dense<0xFF800000> : vector<8xf32>
    %101 = vector.multi_reduction <maximumf>, %100, %cst_41 [1] : vector<8x8xf32> to vector<8xf32>
    %102 = vector.shape_cast %101 : vector<8xf32> to vector<8x1xf32>
    %103 = vector.broadcast %102 : vector<8x1xf32> to vector<8x8xf32>
    %104 = arith.subf %100, %103 : vector<8x8xf32>
    %105 = math.exp %104 : vector<8x8xf32>
    %cst_42 = arith.constant dense<0.000000e+00> : vector<8xf32>
    %106 = vector.multi_reduction <add>, %105, %cst_42 [1] : vector<8x8xf32> to vector<8xf32>
    %107 = vector.shape_cast %106 : vector<8xf32> to vector<8x1xf32>
    %108 = tpu.reciprocal %107 {approx = true} : vector<8x1xf32> -> vector<8x1xf32>
    %109 = vector.broadcast %108 : vector<8x1xf32> to vector<8x8xf32>
    %110 = arith.mulf %105, %109 : vector<8x8xf32>
    %cst_43 = arith.constant dense<0.000000e+00> : vector<8x8xf32>
    %111 = tpu.matmul %110, %95, %cst_43 {dimension_numbers = #tpu.dot_dimension_numbers<[1], [0], [0], [1], [0, 0, 1, 1], [], []>} : vector<8x8xf32>, vector<8x8xf32>, vector<8x8xf32> -> vector<8x8xf32>
    %c0_44 = arith.constant 0 : index
    %c24 = arith.constant 24 : index
    %112 = vector.load %arg17[%c0_44, %c24] : memref<16x32xf32, #tpu.memory_space<vmem>>, vector<8x8xf32>
    tpu.vector_store %arg17[%c0_44, %c24], %111 {strides = array<i32>} : memref<16x32xf32, #tpu.memory_space<vmem>>, vector<8x8xf32>,
    %113 = vector.extract_strided_slice %28 {offsets = [8, 0], sizes = [8, 8], strides = [1, 1]} : vector<16x32xf32> to vector<8x8xf32>
    %114 = vector.extract_strided_slice %30 {offsets = [8, 0], sizes = [8, 8], strides = [1, 1]} : vector<16x32xf32> to vector<8x8xf32>
    %115 = vector.extract_strided_slice %32 {offsets = [8, 0], sizes = [8, 8], strides = [1, 1]} : vector<16x32xf32> to vector<8x8xf32>
    %116 = tpu.transpose %114, [1, 0] : vector<8x8xf32> -> vector<8x8xf32>
    %cst_45 = arith.constant dense<0.000000e+00> : vector<8x8xf32>
    %117 = tpu.matmul %113, %116, %cst_45 {dimension_numbers = #tpu.dot_dimension_numbers<[1], [0], [0], [1], [0, 0, 1, 1], [], []>} : vector<8x8xf32>, vector<8x8xf32>, vector<8x8xf32> -> vector<8x8xf32>
    %cst_46 = arith.constant 0.353553385 : f32
    %118 = vector.broadcast %cst_46 : f32 to vector<8x8xf32>
    %119 = arith.mulf %117, %118 : vector<8x8xf32>
    %120 = arith.addf %119, %1 : vector<8x8xf32>
    %cst_47 = arith.constant dense<0xFF800000> : vector<8xf32>
    %121 = vector.multi_reduction <maximumf>, %120, %cst_47 [1] : vector<8x8xf32> to vector<8xf32>
    %122 = vector.shape_cast %121 : vector<8xf32> to vector<8x1xf32>
    %123 = vector.broadcast %122 : vector<8x1xf32> to vector<8x8xf32>
    %124 = arith.subf %120, %123 : vector<8x8xf32>
    %125 = math.exp %124 : vector<8x8xf32>
    %cst_48 = arith.constant dense<0.000000e+00> : vector<8xf32>
    %126 = vector.multi_reduction <add>, %125, %cst_48 [1] : vector<8x8xf32> to vector<8xf32>
    %127 = vector.shape_cast %126 : vector<8xf32> to vector<8x1xf32>
    %128 = tpu.reciprocal %127 {approx = true} : vector<8x1xf32> -> vector<8x1xf32>
    %129 = vector.broadcast %128 : vector<8x1xf32> to vector<8x8xf32>
    %130 = arith.mulf %125, %129 : vector<8x8xf32>
    %cst_49 = arith.constant dense<0.000000e+00> : vector<8x8xf32>
    %131 = tpu.matmul %130, %115, %cst_49 {dimension_numbers = #tpu.dot_dimension_numbers<[1], [0], [0], [1], [0, 0, 1, 1], [], []>} : vector<8x8xf32>, vector<8x8xf32>, vector<8x8xf32> -> vector<8x8xf32>
    %c8_50 = arith.constant 8 : index
    %c0_51 = arith.constant 0 : index
    %132 = vector.load %arg17[%c8_50, %c0_51] : memref<16x32xf32, #tpu.memory_space<vmem>>, vector<8x8xf32>
    tpu.vector_store %arg17[%c8_50, %c0_51], %131 {strides = array<i32>} : memref<16x32xf32, #tpu.memory_space<vmem>>, vector<8x8xf32>,
    %133 = vector.extract_strided_slice %28 {offsets = [8, 8], sizes = [8, 8], strides = [1, 1]} : vector<16x32xf32> to vector<8x8xf32>
    %134 = vector.extract_strided_slice %30 {offsets = [8, 8], sizes = [8, 8], strides = [1, 1]} : vector<16x32xf32> to vector<8x8xf32>
    %135 = vector.extract_strided_slice %32 {offsets = [8, 8], sizes = [8, 8], strides = [1, 1]} : vector<16x32xf32> to vector<8x8xf32>
    %136 = tpu.transpose %134, [1, 0] : vector<8x8xf32> -> vector<8x8xf32>
    %cst_52 = arith.constant dense<0.000000e+00> : vector<8x8xf32>
    %137 = tpu.matmul %133, %136, %cst_52 {dimension_numbers = #tpu.dot_dimension_numbers<[1], [0], [0], [1], [0, 0, 1, 1], [], []>} : vector<8x8xf32>, vector<8x8xf32>, vector<8x8xf32> -> vector<8x8xf32>
    %cst_53 = arith.constant 0.353553385 : f32
    %138 = vector.broadcast %cst_53 : f32 to vector<8x8xf32>
    %139 = arith.mulf %137, %138 : vector<8x8xf32>
    %140 = arith.addf %139, %1 : vector<8x8xf32>
    %cst_54 = arith.constant dense<0xFF800000> : vector<8xf32>
    %141 = vector.multi_reduction <maximumf>, %140, %cst_54 [1] : vector<8x8xf32> to vector<8xf32>
    %142 = vector.shape_cast %141 : vector<8xf32> to vector<8x1xf32>
    %143 = vector.broadcast %142 : vector<8x1xf32> to vector<8x8xf32>
    %144 = arith.subf %140, %143 : vector<8x8xf32>
    %145 = math.exp %144 : vector<8x8xf32>
    %cst_55 = arith.constant dense<0.000000e+00> : vector<8xf32>
    %146 = vector.multi_reduction <add>, %145, %cst_55 [1] : vector<8x8xf32> to vector<8xf32>
    %147 = vector.shape_cast %146 : vector<8xf32> to vector<8x1xf32>
    %148 = tpu.reciprocal %147 {approx = true} : vector<8x1xf32> -> vector<8x1xf32>
    %149 = vector.broadcast %148 : vector<8x1xf32> to vector<8x8xf32>
    %150 = arith.mulf %145, %149 : vector<8x8xf32>
    %cst_56 = arith.constant dense<0.000000e+00> : vector<8x8xf32>
    %151 = tpu.matmul %150, %135, %cst_56 {dimension_numbers = #tpu.dot_dimension_numbers<[1], [0], [0], [1], [0, 0, 1, 1], [], []>} : vector<8x8xf32>, vector<8x8xf32>, vector<8x8xf32> -> vector<8x8xf32>
    %c8_57 = arith.constant 8 : index
    %c8_58 = arith.constant 8 : index
    %152 = vector.load %arg17[%c8_57, %c8_58] : memref<16x32xf32, #tpu.memory_space<vmem>>, vector<8x8xf32>
    tpu.vector_store %arg17[%c8_57, %c8_58], %151 {strides = array<i32>} : memref<16x32xf32, #tpu.memory_space<vmem>>, vector<8x8xf32>,
    %153 = vector.extract_strided_slice %28 {offsets = [8, 16], sizes = [8, 8], strides = [1, 1]} : vector<16x32xf32> to vector<8x8xf32>
    %154 = vector.extract_strided_slice %30 {offsets = [8, 16], sizes = [8, 8], strides = [1, 1]} : vector<16x32xf32> to vector<8x8xf32>
    %155 = vector.extract_strided_slice %32 {offsets = [8, 16], sizes = [8, 8], strides = [1, 1]} : vector<16x32xf32> to vector<8x8xf32>
    %156 = tpu.transpose %154, [1, 0] : vector<8x8xf32> -> vector<8x8xf32>
    %cst_59 = arith.constant dense<0.000000e+00> : vector<8x8xf32>
    %157 = tpu.matmul %153, %156, %cst_59 {dimension_numbers = #tpu.dot_dimension_numbers<[1], [0], [0], [1], [0, 0, 1, 1], [], []>} : vector<8x8xf32>, vector<8x8xf32>, vector<8x8xf32> -> vector<8x8xf32>
    %cst_60 = arith.constant 0.353553385 : f32
    %158 = vector.broadcast %cst_60 : f32 to vector<8x8xf32>
    %159 = arith.mulf %157, %158 : vector<8x8xf32>
    %160 = arith.addf %159, %1 : vector<8x8xf32>
    %cst_61 = arith.constant dense<0xFF800000> : vector<8xf32>
    %161 = vector.multi_reduction <maximumf>, %160, %cst_61 [1] : vector<8x8xf32> to vector<8xf32>
    %162 = vector.shape_cast %161 : vector<8xf32> to vector<8x1xf32>
    %163 = vector.broadcast %162 : vector<8x1xf32> to vector<8x8xf32>
    %164 = arith.subf %160, %163 : vector<8x8xf32>
    %165 = math.exp %164 : vector<8x8xf32>
    %cst_62 = arith.constant dense<0.000000e+00> : vector<8xf32>
    %166 = vector.multi_reduction <add>, %165, %cst_62 [1] : vector<8x8xf32> to vector<8xf32>
    %167 = vector.shape_cast %166 : vector<8xf32> to vector<8x1xf32>
    %168 = tpu.reciprocal %167 {approx = true} : vector<8x1xf32> -> vector<8x1xf32>
    %169 = vector.broadcast %168 : vector<8x1xf32> to vector<8x8xf32>
    %170 = arith.mulf %165, %169 : vector<8x8xf32>
    %cst_63 = arith.constant dense<0.000000e+00> : vector<8x8xf32>
    %171 = tpu.matmul %170, %155, %cst_63 {dimension_numbers = #tpu.dot_dimension_numbers<[1], [0], [0], [1], [0, 0, 1, 1], [], []>} : vector<8x8xf32>, vector<8x8xf32>, vector<8x8xf32> -> vector<8x8xf32>
    %c8_64 = arith.constant 8 : index
    %c16_65 = arith.constant 16 : index
    %172 = vector.load %arg17[%c8_64, %c16_65] : memref<16x32xf32, #tpu.memory_space<vmem>>, vector<8x8xf32>
    tpu.vector_store %arg17[%c8_64, %c16_65], %171 {strides = array<i32>} : memref<16x32xf32, #tpu.memory_space<vmem>>, vector<8x8xf32>,
    %173 = vector.extract_strided_slice %28 {offsets = [8, 24], sizes = [8, 8], strides = [1, 1]} : vector<16x32xf32> to vector<8x8xf32>
    %174 = vector.extract_strided_slice %30 {offsets = [8, 24], sizes = [8, 8], strides = [1, 1]} : vector<16x32xf32> to vector<8x8xf32>
    %175 = vector.extract_strided_slice %32 {offsets = [8, 24], sizes = [8, 8], strides = [1, 1]} : vector<16x32xf32> to vector<8x8xf32>
    %176 = tpu.transpose %174, [1, 0] : vector<8x8xf32> -> vector<8x8xf32>
    %cst_66 = arith.constant dense<0.000000e+00> : vector<8x8xf32>
    %177 = tpu.matmul %173, %176, %cst_66 {dimension_numbers = #tpu.dot_dimension_numbers<[1], [0], [0], [1], [0, 0, 1, 1], [], []>} : vector<8x8xf32>, vector<8x8xf32>, vector<8x8xf32> -> vector<8x8xf32>
    %cst_67 = arith.constant 0.353553385 : f32
    %178 = vector.broadcast %cst_67 : f32 to vector<8x8xf32>
    %179 = arith.mulf %177, %178 : vector<8x8xf32>
    %180 = arith.addf %179, %1 : vector<8x8xf32>
    %cst_68 = arith.constant dense<0xFF800000> : vector<8xf32>
    %181 = vector.multi_reduction <maximumf>, %180, %cst_68 [1] : vector<8x8xf32> to vector<8xf32>
    %182 = vector.shape_cast %181 : vector<8xf32> to vector<8x1xf32>
    %183 = vector.broadcast %182 : vector<8x1xf32> to vector<8x8xf32>
    %184 = arith.subf %180, %183 : vector<8x8xf32>
    %185 = math.exp %184 : vector<8x8xf32>
    %cst_69 = arith.constant dense<0.000000e+00> : vector<8xf32>
    %186 = vector.multi_reduction <add>, %185, %cst_69 [1] : vector<8x8xf32> to vector<8xf32>
    %187 = vector.shape_cast %186 : vector<8xf32> to vector<8x1xf32>
    %188 = tpu.reciprocal %187 {approx = true} : vector<8x1xf32> -> vector<8x1xf32>
    %189 = vector.broadcast %188 : vector<8x1xf32> to vector<8x8xf32>
    %190 = arith.mulf %185, %189 : vector<8x8xf32>
    %cst_70 = arith.constant dense<0.000000e+00> : vector<8x8xf32>
    %191 = tpu.matmul %190, %175, %cst_70 {dimension_numbers = #tpu.dot_dimension_numbers<[1], [0], [0], [1], [0, 0, 1, 1], [], []>} : vector<8x8xf32>, vector<8x8xf32>, vector<8x8xf32> -> vector<8x8xf32>
    %c8_71 = arith.constant 8 : index
    %c24_72 = arith.constant 24 : index
    %192 = vector.load %arg17[%c8_71, %c24_72] : memref<16x32xf32, #tpu.memory_space<vmem>>, vector<8x8xf32>
    tpu.vector_store %arg17[%c8_71, %c24_72], %191 {strides = array<i32>} : memref<16x32xf32, #tpu.memory_space<vmem>>, vector<8x8xf32>,
    %c0_73 = arith.constant 0 : index
    %c0_74 = arith.constant 0 : index
    %193 = vector.load %arg17[%c0_73, %c0_74] : memref<16x32xf32, #tpu.memory_space<vmem>>, vector<16x32xf32>
    %194 = arith.truncf %193 : vector<16x32xf32> to vector<16x32xbf16>
    %c0_75 = arith.constant 0 : index
    %c0_76 = arith.constant 0 : index
    %195 = vector.load %arg8[%c0_75, %c0_76] : memref<32x32xbf16, #tpu.memory_space<vmem>>, vector<32x32xbf16>
    %cst_77 = arith.constant dense<0.000000e+00> : vector<16x32xf32>
    %196 = tpu.matmul %194, %195, %cst_77 {dimension_numbers = #tpu.dot_dimension_numbers<[1], [0], [0], [1], [0, 0, 1, 1], [], []>} : vector<16x32xbf16>, vector<32x32xbf16>, vector<16x32xf32> -> vector<16x32xf32>
    %c0_78 = arith.constant 0 : index
    %c0_79 = arith.constant 0 : index
    %197 = vector.load %arg9[%c0_78, %c0_79] : memref<1x32xf32, #tpu.memory_space<vmem>>, vector<1x32xf32>
    %198 = vector.broadcast %197 : vector<1x32xf32> to vector<16x32xf32>
    %199 = arith.addf %196, %198 : vector<16x32xf32>
    %200 = arith.addf %0, %199 : vector<16x32xf32>
    %c0_80 = arith.constant 0 : index
    %c0_81 = arith.constant 0 : index
    %201 = vector.load %arg10[%c0_80, %c0_81] : memref<1x32xf32, #tpu.memory_space<vmem>>, vector<1x32xf32>
    %c0_82 = arith.constant 0 : index
    %c0_83 = arith.constant 0 : index
    %202 = vector.load %arg11[%c0_82, %c0_83] : memref<1x32xf32, #tpu.memory_space<vmem>>, vector<1x32xf32>
    %cst_84 = arith.constant dense<0.000000e+00> : vector<16xf32>
    %203 = vector.multi_reduction <add>, %200, %cst_84 [1] : vector<16x32xf32> to vector<16xf32>
    %204 = vector.shape_cast %203 : vector<16xf32> to vector<16x1xf32>
    %cst_85 = arith.constant 3.200000e+01 : f32
    %205 = vector.broadcast %cst_85 : f32 to vector<16x1xf32>
    %206 = arith.divf %204, %205 : vector<16x1xf32>
    %207 = vector.broadcast %206 : vector<16x1xf32> to vector<16x32xf32>
    %208 = arith.subf %200, %207 : vector<16x32xf32>
    %209 = arith.mulf %208, %208 : vector<16x32xf32>
    %cst_86 = arith.constant dense<0.000000e+00> : vector<16xf32>
    %210 = vector.multi_reduction <add>, %209, %cst_86 [1] : vector<16x32xf32> to vector<16xf32>
    %211 = vector.shape_cast %210 : vector<16xf32> to vector<16x1xf32>
    %cst_87 = arith.constant 3.200000e+01 : f32
    %212 = vector.broadcast %cst_87 : f32 to vector<16x1xf32>
    %213 = arith.divf %211, %212 : vector<16x1xf32>
    %214 = vector.broadcast %206 : vector<16x1xf32> to vector<16x32xf32>
    %215 = arith.subf %200, %214 : vector<16x32xf32>
    %cst_88 = arith.constant 9.99999974E-6 : f32
    %216 = vector.broadcast %cst_88 : f32 to vector<16x1xf32>
    %217 = arith.addf %213, %216 : vector<16x1xf32>
    %218 = math.rsqrt %217 : vector<16x1xf32>
    %219 = vector.broadcast %218 : vector<16x1xf32> to vector<16x32xf32>
    %220 = arith.mulf %215, %219 : vector<16x32xf32>
    %221 = vector.broadcast %201 : vector<1x32xf32> to vector<16x32xf32>
    %222 = arith.mulf %220, %221 : vector<16x32xf32>
    %223 = vector.broadcast %202 : vector<1x32xf32> to vector<16x32xf32>
    %224 = arith.addf %222, %223 : vector<16x32xf32>
    %225 = arith.truncf %224 : vector<16x32xf32> to vector<16x32xbf16>
    %c0_89 = arith.constant 0 : index
    %c0_90 = arith.constant 0 : index
    %226 = vector.load %arg12[%c0_89, %c0_90] : memref<32x128xbf16, #tpu.memory_space<vmem>>, vector<32x128xbf16>
    %cst_91 = arith.constant dense<0.000000e+00> : vector<16x128xf32>
    %227 = tpu.matmul %225, %226, %cst_91 {dimension_numbers = #tpu.dot_dimension_numbers<[1], [0], [0], [1], [0, 0, 1, 1], [], []>} : vector<16x32xbf16>, vector<32x128xbf16>, vector<16x128xf32> -> vector<16x128xf32>
    %c0_92 = arith.constant 0 : index
    %c0_93 = arith.constant 0 : index
    %228 = vector.load %arg13[%c0_92, %c0_93] : memref<1x128xf32, #tpu.memory_space<vmem>>, vector<1x128xf32>
    %229 = vector.broadcast %228 : vector<1x128xf32> to vector<16x128xf32>
    %230 = arith.addf %227, %229 : vector<16x128xf32>
    %cst_94 = arith.constant 5.000000e-01 : f32
    %231 = vector.broadcast %cst_94 : f32 to vector<16x128xf32>
    %232 = arith.mulf %231, %230 : vector<16x128xf32>
    %cst_95 = arith.constant 4.471500e-02 : f32
    %233 = vector.broadcast %cst_95 : f32 to vector<16x128xf32>
    %234 = arith.mulf %233, %230 : vector<16x128xf32>
    %235 = arith.mulf %234, %230 : vector<16x128xf32>
    %236 = arith.mulf %235, %230 : vector<16x128xf32>
    %237 = arith.addf %230, %236 : vector<16x128xf32>
    %cst_96 = arith.constant 0.797884583 : f32
    %238 = vector.broadcast %cst_96 : f32 to vector<16x128xf32>
    %239 = arith.mulf %238, %237 : vector<16x128xf32>
    %240 = math.tanh %239 : vector<16x128xf32>
    %cst_97 = arith.constant 1.000000e+00 : f32
    %241 = vector.broadcast %cst_97 : f32 to vector<16x128xf32>
    %242 = arith.addf %241, %240 : vector<16x128xf32>
    %243 = arith.mulf %232, %242 : vector<16x128xf32>
    %244 = arith.truncf %243 : vector<16x128xf32> to vector<16x128xbf16>
    %c0_98 = arith.constant 0 : index
    %c0_99 = arith.constant 0 : index
    %245 = vector.load %arg14[%c0_98, %c0_99] : memref<128x32xbf16, #tpu.memory_space<vmem>>, vector<128x32xbf16>
    %cst_100 = arith.constant dense<0.000000e+00> : vector<16x32xf32>
    %246 = tpu.matmul %244, %245, %cst_100 {dimension_numbers = #tpu.dot_dimension_numbers<[1], [0], [0], [1], [0, 0, 1, 1], [], []>} : vector<16x128xbf16>, vector<128x32xbf16>, vector<16x32xf32> -> vector<16x32xf32>
    %c0_101 = arith.constant 0 : index
    %c0_102 = arith.constant 0 : index
    %247 = vector.load %arg15[%c0_101, %c0_102] : memref<1x32xf32, #tpu.memory_space<vmem>>, vector<1x32xf32>
    %248 = vector.broadcast %247 : vector<1x32xf32> to vector<16x32xf32>
    %249 = arith.addf %246, %248 : vector<16x32xf32>
    %250 = arith.addf %224, %249 : vector<16x32xf32>
    %c0_103 = arith.constant 0 : index
    %c0_104 = arith.constant 0 : index
    %251 = vector.load %arg16[%c0_103, %c0_104] : memref<16x32xf32, #tpu.memory_space<vmem>>, vector<16x32xf32>
    tpu.vector_store %arg16[%c0_103, %c0_104], %250 {strides = array<i32>} : memref<16x32xf32, #tpu.memory_space<vmem>>, vector<16x32xf32>,
    return
  }
  func.func @transform_0(%arg0: i32) -> (i32, i32) {
    %c0_i32 = arith.constant 0 : i32
    %c0_i32_0 = arith.constant 0 : i32
    return %arg0, %c0_i32 : i32, i32
  }
  func.func @transform_1(%arg0: i32) -> (i32, i32) {
    %c0_i32 = arith.constant 0 : i32
    %c0_i32_0 = arith.constant 0 : i32
    %c0_i32_1 = arith.constant 0 : i32
    return %c0_i32, %c0_i32_0 : i32, i32
  }
  func.func @transform_2(%arg0: i32) -> (i32, i32) {
    %c0_i32 = arith.constant 0 : i32
    %c0_i32_0 = arith.constant 0 : i32
    %c0_i32_1 = arith.constant 0 : i32
    return %c0_i32, %c0_i32_0 : i32, i32
  }
  func.func @transform_3(%arg0: i32) -> (i32, i32) {
    %c0_i32 = arith.constant 0 : i32
    %c0_i32_0 = arith.constant 0 : i32
    %c0_i32_1 = arith.constant 0 : i32
    return %c0_i32, %c0_i32_0 : i32, i32
  }
  func.func @transform_4(%arg0: i32) -> (i32, i32) {
    %c0_i32 = arith.constant 0 : i32
    %c0_i32_0 = arith.constant 0 : i32
    %c0_i32_1 = arith.constant 0 : i32
    return %c0_i32, %c0_i32_0 : i32, i32
  }
  func.func @transform_5(%arg0: i32) -> (i32, i32) {
    %c0_i32 = arith.constant 0 : i32
    %c0_i32_0 = arith.constant 0 : i32
    %c0_i32_1 = arith.constant 0 : i32
    return %c0_i32, %c0_i32_0 : i32, i32
  }
  func.func @transform_6(%arg0: i32) -> (i32, i32) {
    %c0_i32 = arith.constant 0 : i32
    %c0_i32_0 = arith.constant 0 : i32
    %c0_i32_1 = arith.constant 0 : i32
    return %c0_i32, %c0_i32_0 : i32, i32
  }
  func.func @transform_7(%arg0: i32) -> (i32, i32) {
    %c0_i32 = arith.constant 0 : i32
    %c0_i32_0 = arith.constant 0 : i32
    %c0_i32_1 = arith.constant 0 : i32
    return %c0_i32, %c0_i32_0 : i32, i32
  }
  func.func @transform_8(%arg0: i32) -> (i32, i32) {
    %c0_i32 = arith.constant 0 : i32
    %c0_i32_0 = arith.constant 0 : i32
    %c0_i32_1 = arith.constant 0 : i32
    return %c0_i32, %c0_i32_0 : i32, i32
  }
  func.func @transform_9(%arg0: i32) -> (i32, i32) {
    %c0_i32 = arith.constant 0 : i32
    %c0_i32_0 = arith.constant 0 : i32
    %c0_i32_1 = arith.constant 0 : i32
    return %c0_i32, %c0_i32_0 : i32, i32
  }
  func.func @transform_10(%arg0: i32) -> (i32, i32) {
    %c0_i32 = arith.constant 0 : i32
    %c0_i32_0 = arith.constant 0 : i32
    %c0_i32_1 = arith.constant 0 : i32
    return %c0_i32, %c0_i32_0 : i32, i32
  }
  func.func @transform_11(%arg0: i32) -> (i32, i32) {
    %c0_i32 = arith.constant 0 : i32
    %c0_i32_0 = arith.constant 0 : i32
    %c0_i32_1 = arith.constant 0 : i32
    return %c0_i32, %c0_i32_0 : i32, i32
  }
  func.func @transform_12(%arg0: i32) -> (i32, i32) {
    %c0_i32 = arith.constant 0 : i32
    %c0_i32_0 = arith.constant 0 : i32
    %c0_i32_1 = arith.constant 0 : i32
    return %c0_i32, %c0_i32_0 : i32, i32
  }
  func.func @transform_13(%arg0: i32) -> (i32, i32) {
    %c0_i32 = arith.constant 0 : i32
    %c0_i32_0 = arith.constant 0 : i32
    %c0_i32_1 = arith.constant 0 : i32
    return %c0_i32, %c0_i32_0 : i32, i32
  }
  func.func @transform_14(%arg0: i32) -> (i32, i32) {
    %c0_i32 = arith.constant 0 : i32
    %c0_i32_0 = arith.constant 0 : i32
    %c0_i32_1 = arith.constant 0 : i32
    return %c0_i32, %c0_i32_0 : i32, i32
  }
  func.func @transform_15(%arg0: i32) -> (i32, i32) {
    %c0_i32 = arith.constant 0 : i32
    %c0_i32_0 = arith.constant 0 : i32
    return %arg0, %c0_i32 : i32, i32
  }
}

</mosaic_0001>

<bundles_post_ra>
// kernel: tpu_custom_call.1
= control target key start
LH: loop header
LB: loop body
LE: loop exit
PB: predicated region body
PF: predicated region fallthrough
CT: control target
= control target key end

     0   :  { %20 = vsyncpa [#allocation4], 0  ;;  %s2857_s0 = inlined_call_operand.vmem [shape: f32[16,32], index: 0, kind: input, shape index: {}]   ;;  %s2858_s1 = inlined_call_operand.hbm [shape: f32[8,8], index: 1, kind: input, shape index: {}]   ;;  %s2859_s2 = inlined_call_operand.vmem [shape: f32[1,32], index: 2, kind: input, shape index: {}]   ;;  %s2860_s3 = inlined_call_operand.vmem [shape: f32[1,32], index: 3, kind: input, shape index: {}]   ;;  %s2861_s4 = inlined_call_operand.vmem [shape: bf16[32,32], index: 4, kind: input, shape index: {}]   ;;  %s2862_s5 = inlined_call_operand.vmem [shape: bf16[32,32], index: 5, kind: input, shape index: {}]   ;;  %s2863_s6 = inlined_call_operand.vmem [shape: bf16[32,32], index: 6, kind: input, shape index: {}]   ;;  %s2864_s7 = inlined_call_operand.vmem [shape: bf16[32,32], index: 7, kind: input, shape index: {}]   ;;  %s2865_s8 = inlined_call_operand.hbm [shape: f32[1,32], index: 8, kind: input, shape index: {}]   ;;  %s2866_s9 = inlined_call_operand.hbm [shape: f32[1,32], index: 9, kind: input, shape index: {}]   ;;  %s2867_s10 = inlined_call_operand.vmem [shape: f32[1,32], index: 10, kind: input, shape index: {}]   ;;  %s2868_s11 = inlined_call_operand.vmem [shape: bf16[32,128], index: 11, kind: input, shape index: {}]   ;;  %s2869_s12 = inlined_call_operand.vmem [shape: f32[1,128], index: 12, kind: input, shape index: {}]   ;;  %s2870_s13 = inlined_call_operand.vmem [shape: bf16[128,32], index: 13, kind: input, shape index: {}]   ;;  %s2871_s14 = inlined_call_operand.vmem [shape: f32[1,32], index: 14, kind: input, shape index: {}]   ;;  %s2872_s15 = inlined_call_operand.hbm [shape: f32[16,32], index: 15, kind: output, shape index: {}]  }
   0x1   :  { %21 = vsyncpa [#allocation7], 0 }
   0x2   :  { %22 = vsyncpa [#allocation5], 0  ;;  %s2431_s18 = smov [#allocation6]   ;;  %s2432_s20 = smov [#allocation3]  }
   0x3   :  { %s53_s19 = sshll.u32 %s2431_s18, 4  ;;  %s31_s21 = sshll.u32 %s2432_s20, 4  ;;  %s54_s19 = int_to_ptr.vmem [resolvable:$true] %s53_s19  ;;  %s32_s21 = int_to_ptr.vmem [resolvable:$true] %s31_s21 }
   0x4   :  { %s2337_s24 = scalar_lea.hbm %s2865_s8, 16 }
   0x5   :  { %p2338_p0 = scmp.ne.s32.totalorder %s2865_s8, %s2337_s24  ;;  %p2341_p1 = scmp.lt.u32.totalorder %s2337_s24, %s2865_s8 }
   0x7   :  { %p2343_p2 = pnand %p2341_p1, %p2338_p0 }
   0x9   :  { %2346 = shalt.err (!%p2343_p2)
}
   0xa   :  { %s2347_s29 = scalar_lea.vmem %s54_s19, 16  ;;  %s2351_s30 = scalar_lea.vmem %s54_s19, 32 }
   0xb   :  { %p2348_p3 = scmp.ne.s32.totalorder %s54_s19, %s2347_s29  ;;  %p2352_p4 = scmp.lt.s32.totalorder %s54_s19, %s54_s19 }
   0xc   :  { %p2353_p5 = scmp.lt.s32.totalorder %s2351_s30, %s2347_s29 }
   0xe   :  { %p2354_p6 = por %p2353_p5, %p2352_p4 }
  0x10   :  { %p2355_p7 = pnand %p2354_p6, %p2348_p3 }
  0x12   :  { %2358 = shalt.err (!%p2355_p7)
}
  0x13   :  { %56 = dma.hbm_to_vmem [thread:$0]  %s2865_s8, 16, %s54_s19, [#allocation7]  }
  0x14   :  { %s2359_s22 = scalar_lea.hbm %s2858_s1, 128 }
  0x15   :  { %p2360_p8 = scmp.ne.s32.totalorder %s2858_s1, %s2359_s22  ;;  %p2363_p9 = scmp.lt.u32.totalorder %s2359_s22, %s2858_s1 }
  0x17   :  { %p2365_p10 = pnand %p2363_p9, %p2360_p8 }
  0x19   :  { %2368 = shalt.err (!%p2365_p10)
}
  0x1a   :  { %s2369_s27 = scalar_lea.vmem %s32_s21, 128  ;;  %p2374_p12 = scmp.lt.s32.totalorder %s32_s21, %s32_s21 }
  0x1b   :  { %p2370_p11 = scmp.ne.s32.totalorder %s32_s21, %s2369_s27  ;;  %p2375_p13 = scmp.lt.s32.totalorder %s2369_s27, %s2369_s27 }
  0x1d   :  { %p2376_p0 = por %p2375_p13, %p2374_p12 }
  0x1f   :  { %p2377_p1 = pnand %p2376_p0, %p2370_p11 }
  0x21   :  { %2380 = shalt.err (!%p2377_p1)
}
  0x22   :  { %34 = dma.hbm_to_vmem [thread:$0]  %s2858_s1, 128, %s32_s21, [#allocation4]  }
  0x23   :  { %s2433_s28 = smov [#allocation8]   ;;  %s2381_s17 = scalar_lea.hbm %s2866_s9, 16 }
  0x24   :  { %s63_s29 = sshll.u32 %s2433_s28, 4  ;;  %p2382_p2 = scmp.ne.s32.totalorder %s2866_s9, %s2381_s17  ;;  %s64_s29 = int_to_ptr.vmem [resolvable:$true] %s63_s29 }
  0x25   :  { %p2385_p3 = scmp.lt.u32.totalorder %s2381_s17, %s2866_s9 }
  0x27   :  { %p2387_p4 = pnand %p2385_p3, %p2382_p2 }
  0x29   :  { %2390 = shalt.err (!%p2387_p4)
}
  0x2a   :  { %s2391_s24 = scalar_lea.vmem %s64_s29, 16  ;;  %s2395_s1 = scalar_lea.vmem %s64_s29, 32 }
  0x2b   :  { %p2392_p5 = scmp.ne.s32.totalorder %s64_s29, %s2391_s24  ;;  %p2396_p6 = scmp.lt.s32.totalorder %s64_s29, %s64_s29 }
  0x2c   :  { %p2397_p7 = scmp.lt.s32.totalorder %s2395_s1, %s2391_s24 }
  0x2e   :  { %p2398_p8 = por %p2397_p7, %p2396_p6 }
  0x30   :  { %p2399_p9 = pnand %p2398_p8, %p2392_p5 }
  0x32   :  { %2402 = shalt.err (!%p2399_p9)
}
  0x33   :  { %66 = dma.hbm_to_vmem [thread:$0]  %s2866_s9, 16, %s64_s29, [#allocation7]  }
  0x34   :  { %2425 = dma.done.wait [#allocation4], 128  }
  0x35   :  { %2426 = vsyncadd [#allocation4], 4294967168 }
  0x36   :  { %2427 = dma.done.wait [#allocation7], 32  }
  0x37   :  { %2428 = vsyncadd [#allocation7], 4294967264  ;;  %vm92_vm0 = vcmask 261120   ;;  %v2563_v0 = vld [vmem:[%s2857_s0] sm:$0xff]  ;;  %v2568_v1 = vld [vmem:[%s2857_s0 + $0x8] sm:$0xff]  ;;  %v2434_v15 = vmov 0.0  }
  0x38   :  { %v93_v2 = vsel %vm92_vm0, %v2563_v0, 0.0  ;;  %v96_v3 = vsel %vm92_vm0, %v2568_v1, 0.0  ;;  %v2275_v14 = vld [vmem:[%s2861_s4] sm:$0xff]   ;;  %2122 = vmatprep.subr.bf16.mxu1 %v2434_v15  ;;  %2151 = vmatprep.subr.mxu0 %v2434_v15  ;;  %v2276_v16 = vld [vmem:[%s2861_s4 + $0x8] sm:$0xff]   ;;  %vm2435_vm1 = vmmov 0   ;;  %vm311_vm2 = vcmask 64512  }
  0x39   :  { %94 = vadd.xlane.f32.xlu0 %v93_v2  ;;  %2123 = vmatpush3.bf16.msra.mxu1 %v2275_v14  ;;  %v2012_v25 = vld [vmem:[%s2859_s2] ss:$0 sm:$0xff]  ;;  %v2278_v35 = vld [vmem:[%s2862_s5 + $0x8] sm:$0xff]   ;;  %v2638_v51 = vld [vmem:[#allocation3] sm:$0xff]  ;;  %s2438_s21 = smov 104   ;;  %s2439_s25 = smov 8  }
  0x3a   :  { %2126 = vmatprep.mubr.msk.bf16.mxu1 %vm2435_vm1, %v2434_v15  ;;  %2124 = vmatprep.subr.bf16.mxu1 %v2434_v15  ;;  %v2013_v29 = vld [vmem:[%s2860_s3] ss:$0 sm:$0xff]  ;;  %v2280_v37 = vld [vmem:[%s2863_s6 + $0x8] sm:$0xff]   ;;  %s2440_s26 = smov 16   ;;  %s2441_s27 = smov 24   ;;  %vm647_vm3 = vcmask 130112  }
  0x3b   :  { %2153 = vmatprep.mubr.msk.f32.mxu0 %vm2435_vm1, %v2434_v15  ;;  %v2277_v33 = vld [vmem:[%s2862_s5] sm:$0xff]   ;;  %s2436_s5 = smov 120   ;;  %vm820_vm4 = vcmask 195712   ;;  %vm993_vm5 = vcmask 261312   ;;  %s2442_s0 = smov [#allocation9]  }
  0x3c   :  { %v2279_v36 = vld [vmem:[%s2863_s6] sm:$0xff]   ;;  %s2437_s6 = smov 112   ;;  %s1999_s9 = sshll.u32 %s2442_s0, 4  ;;  %s2000_s9 = int_to_ptr.vmem [resolvable:$true] %s1999_s9 }
  0x3d   :  { %97 = vadd.xlane.f32.xlu0 %v96_v3  ;;  %2125 = vmatpush3.bf16.msra.mxu1 %v2276_v16  ;;  %p2408_p11 = scmp.lt.s32.totalorder %s2000_s9, %s2000_s9 }
  0x3e   :  { %2130 = vmatprep.subr.bf16.mxu1 %v2434_v15 }
  0xc6   :  { %v95_v4 = vpop.xlane.xlu0 %94 }
  0xc7   :  { %v100_v5 = vmul.f32 0.03125, %v95_v4 }
  0xc9   :  { %v102_v6 = vsub.f32 %v2563_v0, %v100_v5 }
  0xca   :  { %v98_v7 = vpop.xlane.xlu0 %97 }
  0xcb   :  { %v101_v8 = vmul.f32 0.03125, %v98_v7  ;;  %v104_v9 = vmul.f32 %v102_v6, %v102_v6 }
  0xcd   :  { %v103_v10 = vsub.f32 %v2568_v1, %v101_v8  ;;  %v106_v11 = vsel %vm92_vm0, %v104_v9, 0.0 }
  0xce   :  { %107 = vadd.xlane.f32.xlu1 %v106_v11 }
  0xcf   :  { %v105_v12 = vmul.f32 %v103_v10, %v103_v10 }
  0xd1   :  { %v109_v13 = vsel %vm92_vm0, %v105_v12, 0.0 }
  0xd2   :  { %110 = vadd.xlane.f32.xlu1 %v109_v13 }
 0x15b   :  { %v108_v17 = vpop.xlane.xlu1 %107 }
 0x15c   :  { %v112_v18 = vmul.f32 0.03125, %v108_v17 }
 0x15e   :  { %v114_v19 = vadd.f32 1e-05, %v112_v18 }
 0x15f   :  { %v111_v20 = vpop.xlane.xlu1 %110 }
 0x160   :  { %2293 = vrsqrt.f32 %v114_v19  ;;  %v113_v21 = vmul.f32 0.03125, %v111_v20 }
 0x162   :  { %v115_v22 = vadd.f32 1e-05, %v113_v21 }
 0x164   :  { %2295 = vrsqrt.f32 %v115_v22 }
 0x16a   :  { %v2294_v23 = vpop.eup %2293 }
 0x16b   :  { %v118_v24 = vmul.f32 %v2294_v23, %v102_v6 }
 0x16d   :  { %v126_v28 = vmul.f32 %v2012_v25, %v118_v24 }
 0x16e   :  { %v2296_v26 = vpop.eup %2295 }
 0x16f   :  { %v119_v27 = vmul.f32 %v2296_v26, %v103_v10  ;;  %v134_v31 = vadd.f32 %v2013_v29, %v126_v28 }
 0x171   :  { %v127_v30 = vmul.f32 %v2012_v25, %v119_v27 }
 0x173   :  { %v135_v32 = vadd.f32 %v2013_v29, %v127_v30 }
 0x175   :  { %v136_v34 = vpack.c.bf16 %v135_v32, %v134_v31 }
 0x177   :  { %2127 = vmatmul.mubr.msk.bf16.vlgmr.msra.gmra.mrb[0].mxu1 %vm92_vm0, %v136_v34 }
 0x178   :  { %2131 = vmatpush3.bf16.msra.mxu1 %v2277_v33  ;;  %2134 = vmatprep.mubr.msk.bf16.mxu1 %vm2435_vm1, %v2434_v15 }
 0x179   :  { %2132 = vmatprep.subr.bf16.mxu1 %v2434_v15 }
 0x17c   :  { %2133 = vmatpush3.bf16.msra.mxu1 %v2278_v35 }
 0x17d   :  { %2138 = vmatprep.subr.bf16.mxu1 %v2434_v15 }
 0x17f   :  { %2135 = vmatmul.mubr.msk.bf16.vlgmr.msra.gmra.mrb[4].mxu1 %vm92_vm0, %v136_v34 }
 0x180   :  { %2139 = vmatpush3.bf16.msra.mxu1 %v2279_v36  ;;  %2142 = vmatprep.mubr.msk.bf16.mxu1 %vm2435_vm1, %v2434_v15 }
 0x181   :  { %2140 = vmatprep.subr.bf16.mxu1 %v2434_v15 }
 0x184   :  { %2141 = vmatpush3.bf16.msra.mxu1 %v2280_v37 }
 0x185   :  { %2146 = vmatprep.subr.mxu1 %v2434_v15 }
 0x187   :  { %2143 = vmatmul.mubr.msk.bf16.vlgmr.msra.gmra.mrb[8].mxu1 %vm92_vm0, %v136_v34 }
 0x188   :  { %2148 = vmatprep.mubr.msk.f32.mxu1 %vm2435_vm1, %v2434_v15 }
 0x24a   :  { %v190_v38 = vpop.f32.mrb[0].mxu1 }
 0x24b   :  { %475 = vrot.lane.b32.xlu1 %v190_v38, %s2436_s5  ;;  %v2128_v39 = vpop.f32.mrb[1].mxu1 }
 0x24c   :  { %v2624_v40 = vpop.f32.mrb[2].mxu1 }
 0x24d   :  { %v2129_v41 = vpop.f32.mrb[3].mxu1 }
 0x252   :  { %v247_v42 = vpop.f32.mrb[4].mxu1 }
 0x253   :  { %651 = vrot.lane.b32.xlu1 %v247_v42, %s2437_s6  ;;  %v2136_v43 = vpop.f32.mrb[5].mxu1  ;;  %2147 = vmatpush3.xpose.msk.msra.mxu1 %vm311_vm2, %v247_v42 }
 0x254   :  { %v250_v44 = vpop.f32.mrb[6].mxu1  ;;  %2161 = vmatprep.subr.mxu1 %v2434_v15 }
 0x255   :  { %v2137_v45 = vpop.f32.mrb[7].mxu1 }
 0x256   :  { %2149 = vmatmul.mubr.msk.f32.vlgmr.msra.gmra.mrb[12].mxu1 %vm311_vm2, %v190_v38 }
 0x257   :  { %2163 = vmatprep.mubr.msk.f32.mxu1 %vm2435_vm1, %v2434_v15 }
 0x25a   :  { %v2632_v46 = vpop.f32.mrb[8].mxu1 }
 0x25b   :  { %v2144_v47 = vpop.f32.mrb[9].mxu1  ;;  %2152 = vmatpush3.msra.mxu0 %v2632_v46 }
 0x25c   :  { %v2635_v48 = vpop.f32.mrb[10].mxu1  ;;  %2156 = vmatprep.subr.mxu0 %v2434_v15 }
 0x25d   :  { %v2145_v49 = vpop.f32.mrb[11].mxu1 }
 0x2bd   :  { %v476_v61 = vpop.permute.xlu1 %475 }
 0x2c5   :  { %v652_v62 = vpop.permute.xlu1 %651 }
 0x329   :  { %v384_v50 = vpop.f32.mrb[12].mxu1 }
 0x32a   :  { %v388_v52 = vmul.f32 0.35355338, %v384_v50  ;;  %v2150_v53 = vpop.f32.mrb[13].mxu1 }
 0x32c   :  { %v389_v54 = vadd.f32 %v388_v52, %v2638_v51 }
 0x32e   :  { %v390_v55 = vsel %vm311_vm2, %v389_v54, -inf }
 0x32f   :  { %391 = vmax.xlane.f32.xlu0 %v390_v55 }
 0x345   :  { %477 = vrot.lane.b32.xlu0 %v247_v42, %s2436_s5 }
 0x349   :  { %824 = vrot.lane.b32.xlu0 %v247_v42, %s2438_s21 }
 0x34d   :  { %1160 = vrot.lane.b32.xlu0 %v250_v44, %s2436_s5 }
 0x351   :  { %1333 = vrot.lane.b32.xlu0 %v250_v44, %s2437_s6 }
 0x355   :  { %1505 = vrot.lane.b32.xlu0 %v250_v44, %s2438_s21 }
 0x3bc   :  { %v392_v56 = vpop.xlane.xlu0 %391 }
 0x3bd   :  { %v393_v57 = vsub.f32 %v389_v54, %v392_v56 }
 0x3bf   :  { %v394_v58 = vmul.f32 1.442695, %v393_v57 }
 0x3c0   :  { %v478_v4 = vpop.permute.xlu0 %477 }
 0x3c1   :  { %2297 = vpow2.f32 %v394_v58 }
 0x3c4   :  { %v825_v6 = vpop.permute.xlu0 %824 }
 0x3c8   :  { %v1161_v8 = vpop.permute.xlu0 %1160 }
 0x3cb   :  { %v2298_v59 = vpop.eup %2297 }
 0x3cc   :  { %v396_v60 = vsel %vm311_vm2, %v2298_v59, 0.0  ;;  %v1334_v10 = vpop.permute.xlu0 %1333 }
 0x3cd   :  { %397 = vadd.xlane.f32.xlu1 %v396_v60 }
 0x3d0   :  { %v1506_v12 = vpop.permute.xlu0 %1505 }
 0x3de   :  { %649 = vrot.lane.b32.xlu1 %v190_v38, %s2437_s6 }
 0x3e2   :  { %822 = vrot.lane.b32.xlu1 %v190_v38, %s2438_s21 }
 0x3e6   :  { %1158 = vrot.lane.b32.xlu1 %v2624_v40, %s2436_s5 }
 0x3ea   :  { %1331 = vrot.lane.b32.xlu1 %v2624_v40, %s2437_s6 }
 0x3ee   :  { %1503 = vrot.lane.b32.xlu1 %v2624_v40, %s2438_s21 }
 0x45a   :  { %v398_v63 = vpop.xlane.xlu1 %397 }
 0x45b   :  { %2299 = vrcp.f32 %v398_v63 }
 0x45e   :  { %v650_v5 = vpop.permute.xlu1 %649 }
 0x462   :  { %v823_v7 = vpop.permute.xlu1 %822 }
 0x465   :  { %v2300_v2 = vpop.eup %2299 }
 0x466   :  { %v400_v3 = vmul.f32 %v2300_v2, %v2298_v59  ;;  %v1159_v9 = vpop.permute.xlu1 %1158 }
 0x468   :  { %2154 = vmatmul.mubr.msk.f32.vlgmr.msra.gmra.mrb[0].mxu0 %vm311_vm2, %v400_v3 }
 0x469   :  { %2157 = vmatpush3.xpose.msk.msra.mxu0 %vm311_vm2, %v478_v4  ;;  %2158 = vmatprep.mubr.msk.f32.mxu0 %vm2435_vm1, %v2434_v15 }
 0x46a   :  { %2166 = vmatprep.subr.mxu0 %v2434_v15  ;;  %v1332_v11 = vpop.permute.xlu1 %1331 }
 0x46c   :  { %2159 = vmatmul.mubr.msk.f32.vlgmr.msra.gmra.mrb[2].mxu0 %vm311_vm2, %v476_v61 }
 0x46d   :  { %2167 = vmatpush3.xpose.msk.msra.mxu0 %vm311_vm2, %v652_v62  ;;  %2168 = vmatprep.mubr.msk.f32.mxu0 %vm2435_vm1, %v2434_v15 }
 0x46e   :  { %2176 = vmatprep.subr.mxu0 %v2434_v15  ;;  %v1504_v13 = vpop.permute.xlu1 %1503 }
 0x470   :  { %2169 = vmatmul.mubr.msk.f32.vlgmr.msra.gmra.mrb[4].mxu0 %vm311_vm2, %v650_v5 }
 0x471   :  { %2177 = vmatpush3.xpose.msk.msra.mxu0 %vm311_vm2, %v825_v6  ;;  %2178 = vmatprep.mubr.msk.f32.mxu0 %vm2435_vm1, %v2434_v15 }
 0x472   :  { %2186 = vmatprep.subr.mxu0 %v2434_v15 }
 0x474   :  { %2179 = vmatmul.mubr.msk.f32.vlgmr.msra.gmra.mrb[6].mxu0 %vm311_vm2, %v823_v7 }
 0x475   :  { %2187 = vmatpush3.xpose.msk.msra.mxu0 %vm311_vm2, %v250_v44  ;;  %2188 = vmatprep.mubr.msk.f32.mxu0 %vm2435_vm1, %v2434_v15 }
 0x476   :  { %2196 = vmatprep.subr.mxu0 %v2434_v15 }
 0x478   :  { %2189 = vmatmul.mubr.msk.f32.vlgmr.msra.gmra.mrb[8].mxu0 %vm311_vm2, %v2624_v40 }
 0x479   :  { %2197 = vmatpush3.xpose.msk.msra.mxu0 %vm311_vm2, %v1161_v8  ;;  %2198 = vmatprep.mubr.msk.f32.mxu0 %vm2435_vm1, %v2434_v15 }
 0x47a   :  { %2206 = vmatprep.subr.mxu0 %v2434_v15 }
 0x47c   :  { %2199 = vmatmul.mubr.msk.f32.vlgmr.msra.gmra.mrb[10].mxu0 %vm311_vm2, %v1159_v9 }
 0x47d   :  { %2207 = vmatpush3.xpose.msk.msra.mxu0 %vm311_vm2, %v1334_v10  ;;  %2208 = vmatprep.mubr.msk.f32.mxu0 %vm2435_vm1, %v2434_v15 }
 0x47e   :  { %2216 = vmatprep.subr.mxu0 %v2434_v15 }
 0x480   :  { %2209 = vmatmul.mubr.msk.f32.vlgmr.msra.gmra.mrb[12].mxu0 %vm311_vm2, %v1332_v11 }
 0x481   :  { %2217 = vmatpush3.xpose.msk.msra.mxu0 %vm311_vm2, %v1506_v12  ;;  %2218 = vmatprep.mubr.msk.f32.mxu0 %vm2435_vm1, %v2434_v15 }
 0x482   :  { %2226 = vmatprep.subr.bf16.mxu0 %v2434_v15 }
 0x484   :  { %2219 = vmatmul.mubr.msk.f32.vlgmr.msra.gmra.mrb[14].mxu0 %vm311_vm2, %v1504_v13 }
 0x485   :  { %2230 = vmatprep.mubr.msk.bf16.mxu0 %vm2435_vm1, %v2434_v15 }
 0x53b   :  { %v470_v14 = vpop.f32.mrb[0].mxu0 }
 0x53c   :  { %474 = vst.msk [vmem:[#allocation2] sm:$0xff] %vm311_vm2, %v470_v14  ;;  %v2155_v16 = vpop.f32.mrb[1].mxu0 }
 0x53f   :  { %v549_v17 = vpop.f32.mrb[2].mxu0 }
 0x540   :  { %v553_v18 = vmul.f32 0.35355338, %v549_v17  ;;  %v2160_v19 = vpop.f32.mrb[3].mxu0 }
 0x542   :  { %v554_v20 = vadd.f32 %v553_v18, %v2638_v51 }
 0x543   :  { %v723_v21 = vpop.f32.mrb[4].mxu0 }
 0x544   :  { %v727_v22 = vmul.f32 0.35355338, %v723_v21  ;;  %v2170_v23 = vpop.f32.mrb[5].mxu0  ;;  %v555_v24 = vsel %vm311_vm2, %v554_v20, -inf }
 0x545   :  { %556 = vmax.xlane.f32.xlu0 %v555_v24 }
 0x546   :  { %v728_v25 = vadd.f32 %v727_v22, %v2638_v51 }
 0x547   :  { %v896_v26 = vpop.f32.mrb[6].mxu0 }
 0x548   :  { %v900_v27 = vmul.f32 0.35355338, %v896_v26  ;;  %v2180_v28 = vpop.f32.mrb[7].mxu0  ;;  %v729_v29 = vsel %vm311_vm2, %v728_v25, -inf }
 0x549   :  { %730 = vmax.xlane.f32.xlu1 %v729_v29 }
 0x54a   :  { %v901_v30 = vadd.f32 %v900_v27, %v2638_v51 }
 0x54b   :  { %v1067_v31 = vpop.f32.mrb[8].mxu0 }
 0x54c   :  { %v1071_v32 = vmul.f32 0.35355338, %v1067_v31  ;;  %v2190_v33 = vpop.f32.mrb[9].mxu0  ;;  %v902_v34 = vsel %vm311_vm2, %v901_v30, -inf }
 0x54d   :  { %903 = vmax.xlane.f32.xlu0 %v902_v34 }
 0x54e   :  { %v1072_v35 = vadd.f32 %v1071_v32, %v2638_v51 }
 0x54f   :  { %v1232_v36 = vpop.f32.mrb[10].mxu0 }
 0x550   :  { %v1236_v37 = vmul.f32 0.35355338, %v1232_v36  ;;  %v2200_v38 = vpop.f32.mrb[11].mxu0  ;;  %v1073_v39 = vsel %vm311_vm2, %v1072_v35, -inf }
 0x551   :  { %1074 = vmax.xlane.f32.xlu0 %v1073_v39 }
 0x552   :  { %v1237_v40 = vadd.f32 %v1236_v37, %v2638_v51 }
 0x553   :  { %v1405_v41 = vpop.f32.mrb[12].mxu0 }
 0x554   :  { %v1409_v42 = vmul.f32 0.35355338, %v1405_v41  ;;  %v2210_v43 = vpop.f32.mrb[13].mxu0  ;;  %v1238_v44 = vsel %vm311_vm2, %v1237_v40, -inf }
 0x555   :  { %1239 = vmax.xlane.f32.xlu0 %v1238_v44 }
 0x556   :  { %v1410_v45 = vadd.f32 %v1409_v42, %v2638_v51 }
 0x557   :  { %v1577_v47 = vpop.f32.mrb[14].mxu0 }
 0x558   :  { %v1581_v49 = vmul.f32 0.35355338, %v1577_v47  ;;  %v2220_v50 = vpop.f32.mrb[15].mxu0  ;;  %v1411_v52 = vsel %vm311_vm2, %v1410_v45, -inf }
 0x559   :  { %1412 = vmax.xlane.f32.xlu1 %v1411_v52 }
 0x55a   :  { %v1582_v53 = vadd.f32 %v1581_v49, %v2638_v51 }
 0x55c   :  { %v1583_v54 = vsel %vm311_vm2, %v1582_v53, -inf }
 0x55d   :  { %1584 = vmax.xlane.f32.xlu0 %v1583_v54 }
 0x5d2   :  { %v557_v55 = vpop.xlane.xlu0 %556 }
 0x5d3   :  { %v558_v56 = vsub.f32 %v554_v20, %v557_v55 }
 0x5d5   :  { %v559_v57 = vmul.f32 1.442695, %v558_v56 }
 0x5d6   :  { %v731_v58 = vpop.xlane.xlu1 %730 }
 0x5d7   :  { %2301 = vpow2.f32 %v559_v57  ;;  %v732_v59 = vsub.f32 %v728_v25, %v731_v58 }
 0x5d9   :  { %v733_v60 = vmul.f32 1.442695, %v732_v59 }
 0x5da   :  { %v904_v51 = vpop.xlane.xlu0 %903 }
 0x5db   :  { %2303 = vpow2.f32 %v733_v60  ;;  %v905_v6 = vsub.f32 %v901_v30, %v904_v51  ;;  %v2282_v51 = vld [vmem:[%s2864_s7 + $0x8] sm:$0xff]  }
 0x5dd   :  { %v906_v10 = vmul.f32 1.442695, %v905_v6 }
 0x5de   :  { %v1075_v3 = vpop.xlane.xlu0 %1074 }
 0x5df   :  { %v1076_v4 = vsub.f32 %v1072_v35, %v1075_v3 }
 0x5e1   :  { %v2302_v61 = vpop.eup %2301  ;;  %v1077_v7 = vmul.f32 1.442695, %v1076_v4 }
 0x5e2   :  { %v561_v62 = vsel %vm311_vm2, %v2302_v61, 0.0  ;;  %v1240_v9 = vpop.xlane.xlu0 %1239 }
 0x5e3   :  { %562 = vadd.xlane.f32.xlu1 %v561_v62  ;;  %2305 = vpow2.f32 %v1077_v7  ;;  %v1241_v11 = vsub.f32 %v1237_v40, %v1240_v9 }
 0x5e4   :  { %2307 = vpow2.f32 %v906_v10 }
 0x5e5   :  { %v2304_v63 = vpop.eup %2303  ;;  %v1242_v14 = vmul.f32 1.442695, %v1241_v11 }
 0x5e6   :  { %v735_v2 = vsel %vm311_vm2, %v2304_v63, 0.0  ;;  %v1413_v5 = vpop.xlane.xlu1 %1412 }
 0x5e7   :  { %736 = vadd.xlane.f32.xlu0 %v735_v2  ;;  %v1414_v8 = vsub.f32 %v1410_v45, %v1413_v5 }
 0x5e9   :  { %v1415_v12 = vmul.f32 1.442695, %v1414_v8 }
 0x5ea   :  { %v1585_v13 = vpop.xlane.xlu0 %1584 }
 0x5eb   :  { %2309 = vpow2.f32 %v1415_v12  ;;  %v1586_v16 = vsub.f32 %v1582_v53, %v1585_v13 }
 0x5ec   :  { %2311 = vpow2.f32 %v1242_v14 }
 0x5ed   :  { %v1587_v17 = vmul.f32 1.442695, %v1586_v16  ;;  %v2306_v18 = vpop.eup %2305 }
 0x5ee   :  { %v1079_v19 = vsel %vm311_vm2, %v2306_v18, 0.0 }
 0x5ef   :  { %2313 = vpow2.f32 %v1587_v17 }
 0x5f4   :  { %740 = vrot.lane.b32.xlu1 %v2632_v46, %s2437_s6 }
 0x5f8   :  { %913 = vrot.lane.b32.xlu1 %v2632_v46, %s2438_s21 }
 0x5fc   :  { %1250 = vrot.lane.b32.xlu1 %v2635_v48, %s2436_s5 }
 0x5fd   :  { %567 = vrot.lane.b32.xlu0 %v2632_v46, %s2436_s5  ;;  %v2308_v46 = vpop.eup %2307 }
 0x5fe   :  { %v2721_v20 = vpop.eup %2309  ;;  %v908_v21 = vsel %vm311_vm2, %v2308_v46, 0.0 }
 0x5ff   :  { %v1417_v22 = vsel %vm311_vm2, %v2721_v20, 0.0  ;;  %v2312_v23 = vpop.eup %2311 }
 0x600   :  { %v1244_v24 = vsel %vm311_vm2, %v2312_v23, 0.0  ;;  %v2727_v25 = vpop.eup %2313 }
 0x601   :  { %v1589_v26 = vsel %vm311_vm2, %v2727_v25, 0.0 }
 0x61c   :  { %1080 = vadd.xlane.f32.xlu0 %v1079_v19 }
 0x620   :  { %909 = vadd.xlane.f32.xlu1 %v908_v21  ;;  %1418 = vadd.xlane.f32.xlu0 %v1417_v22 }
 0x624   :  { %1245 = vadd.xlane.f32.xlu1 %v1244_v24 }
 0x628   :  { %1590 = vadd.xlane.f32.xlu1 %v1589_v26 }
 0x636   :  { %1422 = vrot.lane.b32.xlu0 %v2635_v48, %s2437_s6 }
 0x639   :  { %1594 = vrot.lane.b32.xlu1 %v2635_v48, %s2438_s21 }
 0x670   :  { %v563_v27 = vpop.xlane.xlu1 %562 }
 0x671   :  { %2315 = vrcp.f32 %v563_v27 }
 0x674   :  { %v737_v28 = vpop.xlane.xlu0 %736  ;;  %v741_v32 = vpop.permute.xlu1 %740 }
 0x675   :  { %2317 = vrcp.f32 %v737_v28 }
 0x678   :  { %v568_v29 = vpop.permute.xlu0 %567  ;;  %v914_v35 = vpop.permute.xlu1 %913 }
 0x679   :  { %2162 = vmatpush3.msra.mxu1 %v568_v29 }
 0x67a   :  { %2171 = vmatprep.subr.mxu1 %v2434_v15 }
 0x67b   :  { %v2316_v30 = vpop.eup %2315 }
 0x67c   :  { %v565_v31 = vmul.f32 %v2316_v30, %v2302_v61  ;;  %v1251_v36 = vpop.permute.xlu1 %1250 }
 0x67e   :  { %2164 = vmatmul.mubr.msk.f32.vlgmr.msra.gmra.mrb[14].mxu1 %vm311_vm2, %v565_v31 }
 0x67f   :  { %v2318_v33 = vpop.eup %2317  ;;  %2172 = vmatpush3.msra.mxu1 %v741_v32  ;;  %2173 = vmatprep.mubr.msk.f32.mxu1 %vm2435_vm1, %v2434_v15 }
 0x680   :  { %v739_v34 = vmul.f32 %v2318_v33, %v2304_v63  ;;  %2181 = vmatprep.subr.mxu1 %v2434_v15  ;;  %v2281_v63 = vld [vmem:[%s2864_s7] sm:$0xff]   ;;  %s2403_s7 = scalar_lea.vmem %s2000_s9, 256 }
 0x681   :  { %2227 = vmatpush3.bf16.msra.mxu0 %v2281_v63  ;;  %v2290_v63 = vld [vmem:[%s2870_s13 + $0x28] sm:$0xff]   ;;  %p2404_p10 = scmp.ne.s32.totalorder %s2000_s9, %s2403_s7  ;;  %p2409_p12 = scmp.lt.s32.totalorder %s2403_s7, %s2403_s7 }
 0x682   :  { %2174 = vmatmul.mubr.msk.f32.vlgmr.msra.gmra.mrb[16].mxu1 %vm311_vm2, %v739_v34  ;;  %2228 = vmatprep.subr.bf16.mxu0 %v2434_v15 }
 0x683   :  { %2182 = vmatpush3.msra.mxu1 %v914_v35  ;;  %2183 = vmatprep.mubr.msk.f32.mxu1 %vm2435_vm1, %v2434_v15  ;;  %p2410_p13 = por %p2409_p12, %p2408_p11 }
 0x684   :  { %2191 = vmatprep.subr.mxu1 %v2434_v15 }
 0x685   :  { %2229 = vmatpush3.bf16.msra.mxu0 %v2282_v51  ;;  %v2292_v51 = vld [vmem:[%s2870_s13 + $0x38] sm:$0xff]   ;;  %p2411_p0 = pnand %p2410_p13, %p2404_p10 }
 0x686   :  { %2242 = vmatprep.subr.bf16.mxu0 %v2434_v15 }
 0x6a9   :  { %v1081_v37 = vpop.xlane.xlu0 %1080 }
 0x6ad   :  { %v910_v38 = vpop.xlane.xlu1 %909  ;;  %v1419_v40 = vpop.xlane.xlu0 %1418 }
 0x6ae   :  { %2319 = vrcp.f32 %v910_v38  ;;  %v2284_v38 = vld [vmem:[%s2868_s11 + $0x8] sm:$0xff]  }
 0x6af   :  { %2321 = vrcp.f32 %v1081_v37 }
 0x6b1   :  { %v1246_v39 = vpop.xlane.xlu1 %1245  ;;  %v1423_v52 = vpop.permute.xlu0 %1422 }
 0x6b2   :  { %2323 = vrcp.f32 %v1246_v39 }
 0x6b3   :  { %2325 = vrcp.f32 %v1419_v40 }
 0x6b5   :  { %v1591_v43 = vpop.xlane.xlu1 %1590 }
 0x6b6   :  { %2327 = vrcp.f32 %v1591_v43 }
 0x6b8   :  { %v2320_v41 = vpop.eup %2319 }
 0x6b9   :  { %v912_v42 = vmul.f32 %v2320_v41, %v2308_v46  ;;  %v2322_v44 = vpop.eup %2321  ;;  %v1595_v54 = vpop.permute.xlu1 %1594  ;;  %v2047_v46 = vld [vmem:[#allocation6] ss:$0 sm:$0xff] }
 0x6ba   :  { %v1083_v45 = vmul.f32 %v2322_v44, %v2306_v18 }
 0x6bb   :  { %2184 = vmatmul.mubr.msk.f32.vlgmr.msra.gmra.mrb[18].mxu1 %vm311_vm2, %v912_v42 }
 0x6bc   :  { %2192 = vmatpush3.msra.mxu1 %v2635_v48  ;;  %2193 = vmatprep.mubr.msk.f32.mxu1 %vm2435_vm1, %v2434_v15  ;;  %v2324_v47 = vpop.eup %2323 }
 0x6bd   :  { %2201 = vmatprep.subr.mxu1 %v2434_v15  ;;  %v1248_v49 = vmul.f32 %v2324_v47, %v2312_v23  ;;  %v2326_v50 = vpop.eup %2325 }
 0x6be   :  { %v1421_v48 = vmul.f32 %v2326_v50, %v2721_v20 }
 0x6bf   :  { %2194 = vmatmul.mubr.msk.f32.vlgmr.msra.gmra.mrb[20].mxu1 %vm311_vm2, %v1083_v45 }
 0x6c0   :  { %2202 = vmatpush3.msra.mxu1 %v1251_v36  ;;  %2203 = vmatprep.mubr.msk.f32.mxu1 %vm2435_vm1, %v2434_v15  ;;  %v2328_v53 = vpop.eup %2327 }
 0x6c1   :  { %2211 = vmatprep.subr.mxu1 %v2434_v15  ;;  %v1593_v55 = vmul.f32 %v2328_v53, %v2727_v25  ;;  %v2052_v53 = vld [vmem:[%s2867_s10] ss:$0 sm:$0xff] }
 0x6c3   :  { %2204 = vmatmul.mubr.msk.f32.vlgmr.msra.gmra.mrb[22].mxu1 %vm311_vm2, %v1248_v49  ;;  %v2051_v49 = vld [vmem:[#allocation8] ss:$0 sm:$0xff] }
 0x6c4   :  { %2212 = vmatpush3.msra.mxu1 %v1423_v52  ;;  %2213 = vmatprep.mubr.msk.f32.mxu1 %vm2435_vm1, %v2434_v15 }
 0x6c5   :  { %2221 = vmatprep.subr.mxu1 %v2434_v15 }
 0x6c7   :  { %2214 = vmatmul.mubr.msk.f32.vlgmr.msra.gmra.mrb[24].mxu1 %vm311_vm2, %v1421_v48 }
 0x6c8   :  { %2222 = vmatpush3.msra.mxu1 %v1595_v54  ;;  %2223 = vmatprep.mubr.msk.f32.mxu1 %vm2435_vm1, %v2434_v15 }
 0x6c9   :  { %2234 = vmatprep.subr.bf16.mxu1 %v2434_v15 }
 0x6cb   :  { %2224 = vmatmul.mubr.msk.f32.vlgmr.msra.gmra.mrb[26].mxu1 %vm311_vm2, %v1593_v55 }
 0x6cc   :  { %2238 = vmatprep.mubr.msk.bf16.mxu1 %vm2435_vm1, %v2434_v15 }
 0x751   :  { %v639_v56 = vpop.f32.mrb[14].mxu1 }
 0x752   :  { %644 = vrot.lane.b32.xlu0 %v639_v56, %s2439_s25  ;;  %v2165_v57 = vpop.f32.mrb[15].mxu1 }
 0x755   :  { %v812_v58 = vpop.f32.mrb[16].mxu1 }
 0x756   :  { %817 = vrot.lane.b32.xlu0 %v812_v58, %s2440_s26  ;;  %v2175_v59 = vpop.f32.mrb[17].mxu1  ;;  %v2285_v58 = vld [vmem:[%s2870_s13] sm:$0xff]  }
 0x757   :  { %v2286_v59 = vld [vmem:[%s2870_s13 + $0x8] sm:$0xff]  }
 0x78e   :  { %v985_v60 = vpop.f32.mrb[18].mxu1 }
 0x78f   :  { %990 = vrot.lane.b32.xlu0 %v985_v60, %s2441_s27  ;;  %v2185_v61 = vpop.f32.mrb[19].mxu1  ;;  %v2287_v60 = vld [vmem:[%s2870_s13 + $0x10] sm:$0xff]  }
 0x790   :  { %v2288_v61 = vld [vmem:[%s2870_s13 + $0x18] sm:$0xff]  }
 0x792   :  { %v1153_v62 = vpop.f32.mrb[20].mxu1 }
 0x793   :  { %1157 = vst.msk [vmem:[#allocation2 + $0x8] sm:$0xff] %vm311_vm2, %v1153_v62  ;;  %v2195_v2 = vpop.f32.mrb[21].mxu1  ;;  %v2289_v62 = vld [vmem:[%s2870_s13 + $0x20] sm:$0xff]  }
 0x794   :  { %v2291_v2 = vld [vmem:[%s2870_s13 + $0x30] sm:$0xff]  }
 0x796   :  { %v1322_v3 = vpop.f32.mrb[22].mxu1 }
 0x797   :  { %1327 = vrot.lane.b32.xlu1 %v1322_v3, %s2439_s25  ;;  %v2205_v4 = vpop.f32.mrb[23].mxu1  ;;  %v2053_v3 = vld [vmem:[%s2869_s12] ss:$0 sm:$0xff] }
 0x79a   :  { %v1494_v5 = vpop.f32.mrb[24].mxu1 }
 0x79b   :  { %1499 = vrot.lane.b32.xlu1 %v1494_v5, %s2440_s26  ;;  %v2215_v6 = vpop.f32.mrb[25].mxu1 }
 0x79e   :  { %v1666_v7 = vpop.f32.mrb[26].mxu1 }
 0x79f   :  { %1671 = vrot.lane.b32.xlu1 %v1666_v7, %s2441_s27  ;;  %v2225_v8 = vpop.f32.mrb[27].mxu1 }
 0x7c4   :  { %v645_v9 = vpop.permute.xlu0 %644 }
 0x7c5   :  { %648 = vst.msk [vmem:[#allocation2] sm:$0xff] %vm647_vm3, %v645_v9 }
 0x7c8   :  { %v818_v10 = vpop.permute.xlu0 %817 }
 0x7c9   :  { %821 = vst.msk [vmem:[#allocation2] sm:$0xff] %vm820_vm4, %v818_v10 }
 0x801   :  { %v991_v11 = vpop.permute.xlu0 %990 }
 0x802   :  { %994 = vst.msk [vmem:[#allocation2] sm:$0xff] %vm993_vm5, %v991_v11 }
 0x809   :  { %v1328_v12 = vpop.permute.xlu1 %1327  ;;  %v1675_v16 = vld [vmem:[#allocation2] sm:$0xff] }
 0x80a   :  { %1330 = vst.msk [vmem:[#allocation2 + $0x8] sm:$0xff] %vm647_vm3, %v1328_v12 }
 0x80d   :  { %v1500_v13 = vpop.permute.xlu1 %1499 }
 0x80e   :  { %1502 = vst.msk [vmem:[#allocation2 + $0x8] sm:$0xff] %vm820_vm4, %v1500_v13 }
 0x811   :  { %v1672_v14 = vpop.permute.xlu1 %1671 }
 0x812   :  { %1674 = vst.msk [vmem:[#allocation2 + $0x8] sm:$0xff] %vm993_vm5, %v1672_v14 }
 0x819   :  { %v1676_v17 = vld [vmem:[#allocation2 + $0x8] sm:$0xff] }
 0x81a   :  { %v1677_v18 = vpack.c.bf16 %v1676_v17, %v1675_v16 }
 0x81c   :  { %2231 = vmatmul.mubr.msk.bf16.vlgmr.msra.gmra.mrb[16].mxu0 %vm92_vm0, %v1677_v18 }
 0x81d   :  { %2258 = vmatprep.mubr.msk.bf16.mxu0 %vm2435_vm1, %v2434_v15  ;;  %2243 = vmatpush3.bf16.msra.mxu0 %v2285_v58 }
 0x81e   :  { %2244 = vmatprep.subr.bf16.mxu0 %v2434_v15 }
 0x821   :  { %2245 = vmatpush3.bf16.msra.mxu0 %v2286_v59 }
 0x822   :  { %2246 = vmatprep.subr.bf16.mxu0 %v2434_v15 }
 0x825   :  { %2247 = vmatpush3.bf16.msra.mxu0 %v2287_v60 }
 0x826   :  { %2248 = vmatprep.subr.bf16.mxu0 %v2434_v15 }
 0x829   :  { %2249 = vmatpush3.bf16.msra.mxu0 %v2288_v61 }
 0x82a   :  { %2250 = vmatprep.subr.bf16.mxu0 %v2434_v15 }
 0x82d   :  { %2251 = vmatpush3.bf16.msra.mxu0 %v2289_v62 }
 0x82e   :  { %2252 = vmatprep.subr.bf16.mxu0 %v2434_v15 }
 0x831   :  { %2253 = vmatpush3.bf16.msra.mxu0 %v2290_v63 }
 0x832   :  { %2254 = vmatprep.subr.bf16.mxu0 %v2434_v15 }
 0x835   :  { %2255 = vmatpush3.bf16.msra.mxu0 %v2291_v2 }
 0x836   :  { %2256 = vmatprep.subr.bf16.mxu0 %v2434_v15 }
 0x839   :  { %2257 = vmatpush3.bf16.msra.mxu0 %v2292_v51 }
 0x8ef   :  { %v1738_v19 = vpop.f32.mrb[16].mxu0 }
 0x8f0   :  { %v1739_v20 = vadd.f32 %v2047_v46, %v1738_v19  ;;  %v2232_v21 = vpop.f32.mrb[17].mxu0 }
 0x8f1   :  { %v1741_v22 = vpop.f32.mrb[18].mxu0 }
 0x8f2   :  { %v1742_v23 = vadd.f32 %v2047_v46, %v1741_v22  ;;  %v2233_v24 = vpop.f32.mrb[19].mxu0  ;;  %v1745_v25 = vadd.f32 %v1739_v20, %v2563_v0 }
 0x8f4   :  { %v1749_v26 = vsel %vm92_vm0, %v1745_v25, 0.0  ;;  %v1746_v27 = vadd.f32 %v1742_v23, %v2568_v1  ;;  %v2283_v1 = vld [vmem:[%s2868_s11] sm:$0xff]  }
 0x8f5   :  { %1750 = vadd.xlane.f32.xlu0 %v1749_v26  ;;  %2235 = vmatpush3.bf16.msra.mxu1 %v2283_v1 }
 0x8f6   :  { %v1752_v28 = vsel %vm92_vm0, %v1746_v27, 0.0  ;;  %2236 = vmatprep.subr.bf16.mxu1 %v2434_v15 }
 0x8f7   :  { %1753 = vadd.xlane.f32.xlu1 %v1752_v28  ;;  %v2057_v28 = vld [vmem:[%s2871_s14] ss:$0 sm:$0xff] }
 0x8f9   :  { %2237 = vmatpush3.bf16.msra.mxu1 %v2284_v38 }
 0x982   :  { %v1751_v29 = vpop.xlane.xlu0 %1750 }
 0x983   :  { %v1755_v30 = vmul.f32 0.03125, %v1751_v29 }
 0x984   :  { %v1754_v31 = vpop.xlane.xlu1 %1753 }
 0x985   :  { %v1757_v32 = vsub.f32 %v1745_v25, %v1755_v30  ;;  %v1756_v33 = vmul.f32 0.03125, %v1754_v31 }
 0x987   :  { %v1758_v34 = vsub.f32 %v1746_v27, %v1756_v33  ;;  %v1759_v35 = vmul.f32 %v1757_v32, %v1757_v32 }
 0x989   :  { %v1761_v36 = vsel %vm92_vm0, %v1759_v35, 0.0  ;;  %v1760_v37 = vmul.f32 %v1758_v34, %v1758_v34 }
 0x98a   :  { %1762 = vadd.xlane.f32.xlu0 %v1761_v36 }
 0x98b   :  { %v1764_v0 = vsel %vm92_vm0, %v1760_v37, 0.0 }
 0x98e   :  { %1765 = vadd.xlane.f32.xlu0 %v1764_v0 }
 0xa17   :  { %v1763_v39 = vpop.xlane.xlu0 %1762 }
 0xa18   :  { %v1767_v40 = vmul.f32 0.03125, %v1763_v39 }
 0xa1a   :  { %v1769_v41 = vadd.f32 1e-05, %v1767_v40 }
 0xa1b   :  { %v1766_v42 = vpop.xlane.xlu0 %1765 }
 0xa1c   :  { %2329 = vrsqrt.f32 %v1769_v41  ;;  %v1768_v43 = vmul.f32 0.03125, %v1766_v42 }
 0xa1e   :  { %v1770_v44 = vadd.f32 1e-05, %v1768_v43 }
 0xa20   :  { %2331 = vrsqrt.f32 %v1770_v44 }
 0xa26   :  { %v2330_v45 = vpop.eup %2329 }
 0xa27   :  { %v1773_v47 = vmul.f32 %v2330_v45, %v1757_v32 }
 0xa29   :  { %v1781_v52 = vmul.f32 %v2051_v49, %v1773_v47 }
 0xa2a   :  { %v2332_v50 = vpop.eup %2331 }
 0xa2b   :  { %v1774_v48 = vmul.f32 %v2332_v50, %v1758_v34  ;;  %v2796_v55 = vadd.f32 %v2052_v53, %v1781_v52 }
 0xa2d   :  { %v1782_v54 = vmul.f32 %v2051_v49, %v1774_v48 }
 0xa2f   :  { %v2798_v56 = vadd.f32 %v2052_v53, %v1782_v54 }
 0xa31   :  { %v1791_v57 = vpack.c.bf16 %v2798_v56, %v2796_v55 }
 0xa33   :  { %2239 = vmatmul.mubr.msk.bf16.vlgmr.msra.gmra.mrb[28].mxu1 %vm92_vm0, %v1791_v57 }
 0xb06   :  { %v1852_v4 = vpop.f32.mrb[28].mxu1 }
 0xb07   :  { %v1853_v5 = vadd.f32 %v2053_v3, %v1852_v4  ;;  %v2240_v6 = vpop.f32.mrb[29].mxu1 }
 0xb08   :  { %v1855_v7 = vpop.f32.mrb[30].mxu1 }
 0xb09   :  { %v1861_v8 = vmul.f32 0.044715, %v1853_v5  ;;  %v1856_v9 = vadd.f32 %v2053_v3, %v1855_v7  ;;  %v2241_v10 = vpop.f32.mrb[31].mxu1  ;;  %v1859_v22 = vmul.f32 0.5, %v1853_v5 }
 0xb0b   :  { %v1863_v11 = vmul.f32 %v1861_v8, %v1853_v5  ;;  %v1862_v12 = vmul.f32 0.044715, %v1856_v9  ;;  %v1860_v23 = vmul.f32 0.5, %v1856_v9 }
 0xb0d   :  { %v1865_v13 = vmul.f32 %v1863_v11, %v1853_v5  ;;  %v1864_v14 = vmul.f32 %v1862_v12, %v1856_v9 }
 0xb0f   :  { %v1867_v16 = vadd.f32 %v1865_v13, %v1853_v5  ;;  %v1866_v17 = vmul.f32 %v1864_v14, %v1856_v9 }
 0xb11   :  { %v1869_v18 = vmul.f32 0.7978846, %v1867_v16  ;;  %v1868_v15 = vadd.f32 %v1866_v17, %v1856_v9 }
 0xb13   :  { %2333 = vtanh.f32 %v1869_v18  ;;  %v1870_v46 = vmul.f32 0.7978846, %v1868_v15 }
 0xb15   :  { %2335 = vtanh.f32 %v1870_v46 }
 0xb1d   :  { %v2334_v19 = vpop.eup %2333 }
 0xb1e   :  { %v1873_v20 = vadd.f32 1.0, %v2334_v19 }
 0xb1f   :  { %v2336_v21 = vpop.eup %2335 }
 0xb20   :  { %v1874_v24 = vadd.f32 1.0, %v2336_v21  ;;  %v1875_v25 = vmul.f32 %v1873_v20, %v1859_v22 }
 0xb22   :  { %v1876_v26 = vmul.f32 %v1874_v24, %v1860_v23 }
 0xb24   :  { %v1877_v27 = vpack.c.bf16 %v1876_v26, %v1875_v25 }
 0xb26   :  { %2259 = vmatmul.mubr.bf16.vlgmr.msra.gmra.mrb[20].mxu0 %v1877_v27 }
 0xbf9   :  { %v1983_v29 = vpop.f32.mrb[20].mxu0 }
 0xbfa   :  { %v1984_v30 = vadd.f32 %v2057_v28, %v1983_v29  ;;  %v2260_v31 = vpop.f32.mrb[21].mxu0 }
 0xbfb   :  { %v1986_v32 = vpop.f32.mrb[22].mxu0 }
 0xbfc   :  { %v1990_v33 = vadd.f32 %v1984_v30, %v2796_v55  ;;  %v1987_v34 = vadd.f32 %v2057_v28, %v1986_v32  ;;  %v2261_v35 = vpop.f32.mrb[23].mxu0 }
 0xbfe   :  { %1992 = vst.msk [vmem:[#allocation9] sm:$0xff] %vm92_vm0, %v1990_v33  ;;  %v1991_v36 = vadd.f32 %v1987_v34, %v2798_v56 }
 0xc00   :  { %1993 = vst.msk [vmem:[#allocation9 + $0x8] sm:$0xff] %vm92_vm0, %v1991_v36 }
 0xc01   :  { %2414 = shalt.err (!%p2411_p0)
}
 0xc02   :  { %s2415_s29 = scalar_lea.hbm %s2872_s15, 256 }
 0xc03   :  { %p2416_p1 = scmp.ne.s32.totalorder %s2872_s15, %s2415_s29  ;;  %p2419_p2 = scmp.lt.u32.totalorder %s2415_s29, %s2872_s15 }
 0xc05   :  { %p2421_p3 = pnand %p2419_p2, %p2416_p1 }
 0xc07   :  { %2424 = shalt.err (!%p2421_p3)
}
 0xc08   :  { %s2443_s17 = smov 128  }
 0xc09   :  { %2005 = dma.vmem_to_hbm [thread:$0]  %s2000_s9, 256, %s2872_s15, [#allocation5], %s2443_s17, %s2443_s17, %s2439_s25  }
 0xc0a   :  { %2429 = dma.done.wait [#allocation5], 256  }
 0xc0b   :  { %2430 = vsyncadd [#allocation5], 4294967040 }
 0xc0c   :  { %2009 = vsyncpa [#allocation4], 1 }
 0xc0d   :  { %2010 = vsyncpa [#allocation7], 1 }
 0xc0e   :  { %2011 = vsyncpa [#allocation5], 1 }

</bundles_post_ra>
